<compile_context>
chip_gen: v7x
topology: tpu7x:2x2x1
jax: 0.10.0
libtpu: 0.0.40
codegen_flags: <defaults>
</compile_context>

<pallas_src>
import functools

import jax
import jax.numpy as jnp
from jax import lax
from jax.experimental import pallas as pl
from jax.experimental.pallas import tpu as pltpu

LEAK = 0.01  # F.leaky_relu default negative_slope


def _leaky_relu(x):
    return jnp.where(x > 0, x, LEAK * x)


def netmon_sl_kernel(obs_ref, adjbd_ref,
                     we1_ref, we2_ref, wg_ref, whead_ref, bias_ref,
                     out_ref, *, iterations):
    TB, N, F = obs_ref.shape
    H = we1_ref.shape[1]          # encoder hidden width
    D = we2_ref.shape[1]          # netmon_dim
    HEAD_PAD = whead_ref.shape[1]  # lane-dense (>=128) fused head width
    rows = TB * N
    mm_dtype = we1_ref.dtype      # matmul input dtype (bf16 or f32)

    # packed biases (f32): row 0 = b_e1, 1 = b_e2, 2 = [b_r|b_z|b_in|b_hn], 3 = head
    b_e1 = bias_ref[0:1, :H]
    b_e2 = bias_ref[1:2, :D]
    b_g = bias_ref[2:3, :4 * D]
    b_hd = bias_ref[3:4, :HEAD_PAD]

    # --- NetMon encoder: MLP with leaky_relu (f32 accumulate / elementwise) ---
    x = obs_ref[...].reshape(rows, F)              # already mm_dtype (host cast)
    h = _leaky_relu(jnp.dot(x, we1_ref[...],
                            preferred_element_type=jnp.float32) + b_e1)
    h = _leaky_relu(jnp.dot(h.astype(mm_dtype), we2_ref[...],
                            preferred_element_type=jnp.float32) + b_e2)

    # hoisted, loop-invariant operands
    adj_bd = adjbd_ref[0]          # (rows, rows) block-diagonal adjacency
    w_g = wg_ref[...]              # (2D, 4D) = [[W_ir W_iz W_in 0],[W_hr W_hz 0 W_hn]]

    def gru_step(h):
        hm = h.astype(mm_dtype)                          # cast once, reused twice
        # neighbor-sum aggregation: ONE MXU matmul for the whole batch tile
        m = jnp.dot(adj_bd, hm, preferred_element_type=jnp.float32)
        # fused GRUCell pre-activations: one (rows,2D)x(2D,4D) matmul
        g = jnp.dot(jnp.concatenate([m.astype(mm_dtype), hm], axis=1), w_g,
                    preferred_element_type=jnp.float32) + b_g
        r = jax.nn.sigmoid(g[:, :D])                     # m@W_ir + h@W_hr + b_r
        z = jax.nn.sigmoid(g[:, D:2 * D])                # m@W_iz + h@W_hz + b_z
        n = jnp.tanh(g[:, 2 * D:3 * D] + r * g[:, 3 * D:])
        return (1.0 - z) * n + z * h

    if iterations <= 8:
        for _ in range(iterations):                      # short chain: full unroll
            h = gru_step(h)
    else:
        h = lax.fori_loop(0, iterations, lambda _, hh: gru_step(hh), h,
                          unroll=4)

    # node_agent_matrix == identity (the `eye` built in NetMonSL.forward), so
    # agent features == node states.  Fused, zero-padded heads -> lane-dense slab.
    out = (jnp.dot(h.astype(mm_dtype), whead_ref[...],
                   preferred_element_type=jnp.float32) + b_hd)
    out_ref[...] = out.reshape(out_ref.shape)


def _cores_per_device():
    """1 for single-TensorCore chips (v5e/v6e), 2 for megacore / v7x."""
    try:
        kind = jax.devices()[0].device_kind.lower()
    except Exception:
        return 1
    if any(t in kind for t in ("v5 lite", "v5e", "v6 lite", "v6e", "v2", "v3")):
        return 1
    return 2


def _choose_tb(B, N, *, min_grid, max_rows=256):
    """Biggest batch tile with tb*N <= max_rows while keeping >= min_grid steps."""
    divs = [d for d in range(1, B + 1) if B % d == 0]
    cands = [d for d in divs if d * N <= max_rows] or [1]
    pref = [d for d in cands if B // d >= min_grid] or cands
    return max(pref)


def netmon_sl_forward(node_obs, node_adj, params, *, iterations, tb=None,
                      use_bf16=True):
    B, N, F = node_obs.shape
    H = params["w_e1"].shape[1]
    D = params["w_ir"].shape[0]
    C = params["w_cls"].shape[1]
    NB = params["w_all"].shape[1]
    HEAD = C + 1 + NB
    HEAD_PAD = max(128, pl.cdiv(HEAD, 128) * 128)   # lane-dense output width

    if tb is None:
        tb = _choose_tb(B, N, min_grid=_cores_per_device())
    assert B % tb == 0
    G = B // tb
    grid = (G,)
    rows = tb * N

    mm_dtype = jnp.bfloat16 if use_bf16 else jnp.float32

    # host-side casts (halve DMA bytes; adjacency is 0/1 so exact in bf16)
    obs = node_obs.astype(mm_dtype)

    # block-diagonal adjacency per batch tile: (G, rows, rows)
    eye_tb = jnp.eye(tb, dtype=mm_dtype)
    adj_bd = (node_adj.astype(mm_dtype).reshape(G, tb, N, 1, N)
              * eye_tb[None, :, None, :, None]).reshape(G, rows, rows)

    # --- pre-pack weights: fused GRU, fused + zero-padded heads, packed biases ---
    w_e1 = params["w_e1"].astype(mm_dtype)
    w_e2 = params["w_e2"].astype(mm_dtype)
    zdd = jnp.zeros((D, D), jnp.float32)
    w_g = jnp.concatenate([
        jnp.concatenate([params["w_ir"], params["w_iz"], params["w_in"], zdd], axis=1),
        jnp.concatenate([params["w_hr"], params["w_hz"], zdd, params["w_hn"]], axis=1),
    ], axis=0).astype(mm_dtype)                                  # (2D, 4D)
    w_head = jnp.concatenate([params["w_cls"], params["w_reg"], params["w_all"]],
                             axis=1)                             # (D, HEAD)
    w_head = jnp.pad(w_head, ((0, 0), (0, HEAD_PAD - HEAD))).astype(mm_dtype)

    # NOTE: b_r / b_z hold the combined (input-path + hidden-path) gate biases,
    # matching the reference math; if params come from a torch GRUCell with
    # separate bias_ih / bias_hh, sum them into b_r / b_z first.
    b_g_full = jnp.concatenate([params["b_r"], params["b_z"],
                                params["b_in"], params["b_hn"]], axis=1)   # (1, 4D)
    b_head = jnp.concatenate([params["b_cls"], params["b_reg"], params["b_all"]],
                             axis=1)                                        # (1, HEAD)
    MAXW = max(H, D, 4 * D, HEAD_PAD)

    def _padrow(v):
        return jnp.pad(v, ((0, 0), (0, MAXW - v.shape[1])))

    bias_pack = jnp.concatenate(
        [_padrow(params["b_e1"]), _padrow(params["b_e2"]),
         _padrow(b_g_full), _padrow(b_head)], axis=0).astype(jnp.float32)  # (4, MAXW)

    weights = [w_e1, w_e2, w_g, w_head, bias_pack]

    def resident(arr):
        nd = arr.ndim
        return pl.BlockSpec(arr.shape, lambda b: (0,) * nd)

    in_specs = [
        pl.BlockSpec((tb, N, F), lambda b: (b, 0, 0)),      # node_obs tile
        pl.BlockSpec((1, rows, rows), lambda b: (b, 0, 0)),  # block-diag adjacency
    ] + [resident(w) for w in weights]

    out_specs = pl.BlockSpec((tb, N, HEAD_PAD), lambda b: (b, 0, 0))
    out_shape = jax.ShapeDtypeStruct((B, N, HEAD_PAD), jnp.float32)

    # VMEM budget check (re-derived for v7x's 64 MiB physical / 32 MiB scoped)
    itm = jnp.dtype(mm_dtype).itemsize
    vmem_est = (2 * (tb * N * F + rows * rows) * itm          # double-buffered inputs
                + 2 * tb * N * HEAD_PAD * 4                   # double-buffered output
                + 2 * sum(int(w.size) * w.dtype.itemsize for w in weights)
                + 8 * rows * 4 * D * 4)                       # f32 temporaries
    vmem_limit = None
    if vmem_est > 24 * 1024 * 1024:
        vmem_limit = min(int(vmem_est * 3 // 2), 60 * 1024 * 1024)

    # Advisory cost estimate so XLA can schedule around this small call.
    flops = int(2 * B * N * (F * H + H * D)
                + G * iterations * (2 * rows * rows * D + 2 * rows * 2 * D * 4 * D)
                + 2 * B * N * D * HEAD_PAD)
    transcendentals = int(iterations * B * N * 3 * D)
    bytes_accessed = int(obs.size * obs.dtype.itemsize
                         + adj_bd.size * adj_bd.dtype.itemsize
                         + sum(int(w.size) * w.dtype.itemsize for w in weights)
                         + B * N * HEAD_PAD * 4)

    combined = pl.pallas_call(
        functools.partial(netmon_sl_kernel, iterations=iterations),
        out_shape=out_shape,
        grid_spec=pltpu.PrefetchScalarGridSpec(
            num_scalar_prefetch=0,
            grid=grid,
            in_specs=in_specs,
            out_specs=out_specs,
        ),
        compiler_params=pltpu.CompilerParams(
            dimension_semantics=("parallel",),
            vmem_limit_bytes=vmem_limit),
        cost_estimate=pl.CostEstimate(flops=flops,
                                      transcendentals=transcendentals,
                                      bytes_accessed=bytes_accessed),
    )(obs, adj_bd, *weights)

    class_logits = combined[..., :C]
    pred = combined[..., C:C + 1]
    pred_all = combined[..., C + 1:HEAD]
    return class_logits, pred, pred_all


def netmon_sl_reference(node_obs, node_adj, params, *, iterations):
    """Pure-JAX f32 reference of the same forward math (for validation)."""
    h = _leaky_relu(node_obs @ params["w_e1"] + params["b_e1"])
    h = _leaky_relu(h @ params["w_e2"] + params["b_e2"])
    for _ in range(iterations):
        m = jnp.einsum('bnm,bmd->bnd', node_adj, h)
        r = jax.nn.sigmoid(m @ params["w_ir"] + h @ params["w_hr"] + params["b_r"])
        z = jax.nn.sigmoid(m @ params["w_iz"] + h @ params["w_hz"] + params["b_z"])
        n = jnp.tanh(m @ params["w_in"] + params["b_in"]
                     + r * (h @ params["w_hn"] + params["b_hn"]))
        h = (1.0 - z) * n + z * h
    logits = h @ params["w_cls"] + params["b_cls"]
    pred = h @ params["w_reg"] + params["b_reg"]
    pred_all = h @ params["w_all"] + params["b_all"]
    return logits, pred, pred_all


def init_params(key, features, enc_hidden, netmon_dim, nb_classes, nb_nodes):
    def dense(k, fan_in, fan_out):
        return (jax.random.normal(k, (fan_in, fan_out), jnp.float32)
                * (1.0 / jnp.sqrt(fan_in)))

    ks = jax.random.split(key, 16)
    D = netmon_dim
    return {
        # encoder MLP: features -> enc_hidden -> netmon_dim
        "w_e1": dense(ks[0], features, enc_hidden),
        "b_e1": jnp.zeros((1, enc_hidden), jnp.float32),
        "w_e2": dense(ks[1], enc_hidden, D),
        "b_e2": jnp.zeros((1, D), jnp.float32),
        # GRU cell (input = aggregated messages, hidden = node state), dim D
        "w_ir": dense(ks[2], D, D), "w_hr": dense(ks[3], D, D),
        "b_r": jnp.zeros((1, D), jnp.float32),
        "w_iz": dense(ks[4], D, D), "w_hz": dense(ks[5], D, D),
        "b_z": jnp.zeros((1, D), jnp.float32),
        "w_in": dense(ks[6], D, D), "w_hn": dense(ks[7], D, D),
        "b_in": jnp.zeros((1, D), jnp.float32),
        "b_hn": jnp.zeros((1, D), jnp.float32),
        # heads: Linear(out_features, nb_classes) / ( ,1) / ( ,nb_nodes)
        "w_cls": dense(ks[8], D, nb_classes),
        "b_cls": jnp.zeros((1, nb_classes), jnp.float32),
        "w_reg": dense(ks[9], D, 1),
        "b_reg": jnp.zeros((1, 1), jnp.float32),
        "w_all": dense(ks[10], D, nb_nodes),
        "b_all": jnp.zeros((1, nb_nodes), jnp.float32),
    }


if __name__ == "__main__":
    # small shapes consistent with the module's forward; B sized so the batch
    # tile gives rows=128 per core (v7x) or a single rows=256 step (v5e/v6e)
    B, N, F = 32, 8, 16            # batch, nodes, node-observation features
    NETMON_DIM = 32
    ENC_HIDDEN = 32
    ITERATIONS = 2
    NB_CLASSES = 4
    NB_NODES = N

    key = jax.random.PRNGKey(0)
    k_obs, k_adj, k_par = jax.random.split(key, 3)

    node_obs = jax.random.normal(k_obs, (B, N, F), jnp.float32)
    # random symmetric 0/1 adjacency without self loops
    a = jax.random.bernoulli(k_adj, 0.4, (B, N, N)).astype(jnp.float32)
    node_adj = jnp.clip(a + jnp.swapaxes(a, 1, 2), 0.0, 1.0)
    node_adj = node_adj * (1.0 - jnp.eye(N, dtype=jnp.float32)[None])

    params = init_params(k_par, F, ENC_HIDDEN, NETMON_DIM, NB_CLASSES, NB_NODES)

    class_logits, pred, pred_all = netmon_sl_forward(
        node_obs, node_adj, params, iterations=ITERATIONS)
    jax.block_until_ready((class_logits, pred, pred_all))

    assert class_logits.shape == (B, N, NB_CLASSES)
    assert pred.shape == (B, N, 1)
    assert pred_all.shape == (B, N, NB_NODES)

    # correctness check vs pure-JAX f32 reference (loose tol: bf16 matmul inputs;
    # note bf16 re-quantization of h compounds with `iterations`)
    ref_logits, ref_pred, ref_all = netmon_sl_reference(
        node_obs, node_adj, params, iterations=ITERATIONS)
    for got, ref in ((class_logits, ref_logits), (pred, ref_pred),
                     (pred_all, ref_all)):
        assert bool(jnp.allclose(got, ref, rtol=1e-1, atol=1e-1)), (
            "max abs err %f" % float(jnp.max(jnp.abs(got - ref))))

    # host-side equivalents of get_class_probabilities / get_prediction
    probs = jax.nn.softmax(class_logits, axis=-1)
    _ = jnp.argmax(probs, axis=-1)

    print("KERNEL_OK")
</pallas_src>

<mosaic_0001>
module attributes {stable_mosaic.version = 11 : i64} {
  func.func @netmon_sl_kernel(%arg0: i32, %arg1: memref<16x8x16xbf16, #tpu.memory_space<vmem>>, %arg2: memref<1x128x128xbf16, #tpu.memory_space<vmem>>, %arg3: memref<16x32xbf16, #tpu.memory_space<vmem>>, %arg4: memref<32x32xbf16, #tpu.memory_space<vmem>>, %arg5: memref<64x128xbf16, #tpu.memory_space<vmem>>, %arg6: memref<32x128xbf16, #tpu.memory_space<vmem>>, %arg7: memref<4x128xf32, #tpu.memory_space<vmem>>, %arg8: memref<16x8x128xf32, #tpu.memory_space<vmem>>) attributes {dimension_semantics = [#tpu.dimension_semantics<parallel>], iteration_bounds = array<i64: 2>, scalar_prefetch = 0 : i64, scratch_operands = 0 : i64, tpu.core_type = #tpu.core_type<tc>, window_params = [{transform_indices = @transform_0, window_bounds = array<i64: 16, 8, 16>}, {transform_indices = @transform_1, window_bounds = array<i64: 1, 128, 128>}, {pipeline_mode = #tpu.pipeline_mode<synchronous>, transform_indices = @transform_2, window_bounds = array<i64: 16, 32>}, {pipeline_mode = #tpu.pipeline_mode<synchronous>, transform_indices = @transform_3, window_bounds = array<i64: 32, 32>}, {pipeline_mode = #tpu.pipeline_mode<synchronous>, transform_indices = @transform_4, window_bounds = array<i64: 64, 128>}, {pipeline_mode = #tpu.pipeline_mode<synchronous>, transform_indices = @transform_5, window_bounds = array<i64: 32, 128>}, {pipeline_mode = #tpu.pipeline_mode<synchronous>, transform_indices = @transform_6, window_bounds = array<i64: 4, 128>}, {transform_indices = @transform_7, window_bounds = array<i64: 16, 8, 128>}]} {
    %c0 = arith.constant 0 : index
    %c0_0 = arith.constant 0 : index
    %0 = vector.load %arg7[%c0, %c0_0] : memref<4x128xf32, #tpu.memory_space<vmem>>, vector<1x32xf32>
    %c1 = arith.constant 1 : index
    %c0_1 = arith.constant 0 : index
    %1 = vector.load %arg7[%c1, %c0_1] : memref<4x128xf32, #tpu.memory_space<vmem>>, vector<1x32xf32>
    %c2 = arith.constant 2 : index
    %c0_2 = arith.constant 0 : index
    %2 = vector.load %arg7[%c2, %c0_2] : memref<4x128xf32, #tpu.memory_space<vmem>>, vector<1x128xf32>
    %c3 = arith.constant 3 : index
    %c0_3 = arith.constant 0 : index
    %3 = vector.load %arg7[%c3, %c0_3] : memref<4x128xf32, #tpu.memory_space<vmem>>, vector<1x128xf32>
    %c0_4 = arith.constant 0 : index
    %c0_5 = arith.constant 0 : index
    %c0_6 = arith.constant 0 : index
    %4 = vector.load %arg1[%c0_4, %c0_5, %c0_6] : memref<16x8x16xbf16, #tpu.memory_space<vmem>>, vector<16x8x16xbf16>
    %5 = vector.shape_cast %4 : vector<16x8x16xbf16> to vector<128x16xbf16>
    %c0_7 = arith.constant 0 : index
    %c0_8 = arith.constant 0 : index
    %6 = vector.load %arg3[%c0_7, %c0_8] : memref<16x32xbf16, #tpu.memory_space<vmem>>, vector<16x32xbf16>
    %cst = arith.constant dense<0.000000e+00> : vector<128x32xf32>
    %7 = tpu.matmul %5, %6, %cst {dimension_numbers = #tpu.dot_dimension_numbers<[1], [0], [0], [1], [0, 0, 1, 1], [], []>} : vector<128x16xbf16>, vector<16x32xbf16>, vector<128x32xf32> -> vector<128x32xf32>
    %8 = vector.broadcast %0 : vector<1x32xf32> to vector<128x32xf32>
    %9 = arith.addf %7, %8 : vector<128x32xf32>
    %cst_9 = arith.constant 0.000000e+00 : f32
    %10 = vector.broadcast %cst_9 : f32 to vector<128x32xf32>
    %11 = arith.cmpf ogt, %9, %10 : vector<128x32xf32>
    %cst_10 = arith.constant 0.00999999977 : f32
    %12 = vector.broadcast %cst_10 : f32 to vector<128x32xf32>
    %13 = arith.mulf %12, %9 : vector<128x32xf32>
    %14 = arith.select %11, %9, %13 : vector<128x32xi1>, vector<128x32xf32>
    %15 = arith.truncf %14 : vector<128x32xf32> to vector<128x32xbf16>
    %c0_11 = arith.constant 0 : index
    %c0_12 = arith.constant 0 : index
    %16 = vector.load %arg4[%c0_11, %c0_12] : memref<32x32xbf16, #tpu.memory_space<vmem>>, vector<32x32xbf16>
    %cst_13 = arith.constant dense<0.000000e+00> : vector<128x32xf32>
    %17 = tpu.matmul %15, %16, %cst_13 {dimension_numbers = #tpu.dot_dimension_numbers<[1], [0], [0], [1], [0, 0, 1, 1], [], []>} : vector<128x32xbf16>, vector<32x32xbf16>, vector<128x32xf32> -> vector<128x32xf32>
    %18 = vector.broadcast %1 : vector<1x32xf32> to vector<128x32xf32>
    %19 = arith.addf %17, %18 : vector<128x32xf32>
    %cst_14 = arith.constant 0.000000e+00 : f32
    %20 = vector.broadcast %cst_14 : f32 to vector<128x32xf32>
    %21 = arith.cmpf ogt, %19, %20 : vector<128x32xf32>
    %cst_15 = arith.constant 0.00999999977 : f32
    %22 = vector.broadcast %cst_15 : f32 to vector<128x32xf32>
    %23 = arith.mulf %22, %19 : vector<128x32xf32>
    %24 = arith.select %21, %19, %23 : vector<128x32xi1>, vector<128x32xf32>
    %c0_16 = arith.constant 0 : index
    %c0_17 = arith.constant 0 : index
    %c0_18 = arith.constant 0 : index
    %25 = vector.load %arg2[%c0_16, %c0_17, %c0_18] : memref<1x128x128xbf16, #tpu.memory_space<vmem>>, vector<1x128x128xbf16>
    %26 = vector.shape_cast %25 : vector<1x128x128xbf16> to vector<128x128xbf16>
    %c0_19 = arith.constant 0 : index
    %c0_20 = arith.constant 0 : index
    %27 = vector.load %arg5[%c0_19, %c0_20] : memref<64x128xbf16, #tpu.memory_space<vmem>>, vector<64x128xbf16>
    %28 = arith.truncf %24 : vector<128x32xf32> to vector<128x32xbf16>
    %cst_21 = arith.constant dense<0.000000e+00> : vector<128x32xf32>
    %29 = tpu.matmul %26, %28, %cst_21 {dimension_numbers = #tpu.dot_dimension_numbers<[1], [0], [0], [1], [0, 0, 1, 1], [], []>} : vector<128x128xbf16>, vector<128x32xbf16>, vector<128x32xf32> -> vector<128x32xf32>
    %30 = arith.truncf %29 : vector<128x32xf32> to vector<128x32xbf16>
    %31 = tpu.concatenate %30, %28 in 1 : vector<128x32xbf16>, vector<128x32xbf16> -> vector<128x64xbf16>
    %cst_22 = arith.constant dense<0.000000e+00> : vector<128x128xf32>
    %32 = tpu.matmul %31, %27, %cst_22 {dimension_numbers = #tpu.dot_dimension_numbers<[1], [0], [0], [1], [0, 0, 1, 1], [], []>} : vector<128x64xbf16>, vector<64x128xbf16>, vector<128x128xf32> -> vector<128x128xf32>
    %33 = vector.broadcast %2 : vector<1x128xf32> to vector<128x128xf32>
    %34 = arith.addf %32, %33 : vector<128x128xf32>
    %35 = vector.extract_strided_slice %34 {offsets = [0, 0], sizes = [128, 32], strides = [1, 1]} : vector<128x128xf32> to vector<128x32xf32>
    %36 = arith.negf %35 : vector<128x32xf32>
    %37 = math.exp %36 : vector<128x32xf32>
    %cst_23 = arith.constant 1.000000e+00 : f32
    %38 = vector.broadcast %cst_23 : f32 to vector<128x32xf32>
    %39 = arith.addf %38, %37 : vector<128x32xf32>
    %40 = arith.divf %38, %39 : vector<128x32xf32>
    %41 = vector.extract_strided_slice %34 {offsets = [0, 32], sizes = [128, 32], strides = [1, 1]} : vector<128x128xf32> to vector<128x32xf32>
    %42 = arith.negf %41 : vector<128x32xf32>
    %43 = math.exp %42 : vector<128x32xf32>
    %cst_24 = arith.constant 1.000000e+00 : f32
    %44 = vector.broadcast %cst_24 : f32 to vector<128x32xf32>
    %45 = arith.addf %44, %43 : vector<128x32xf32>
    %46 = arith.divf %44, %45 : vector<128x32xf32>
    %47 = vector.extract_strided_slice %34 {offsets = [0, 64], sizes = [128, 32], strides = [1, 1]} : vector<128x128xf32> to vector<128x32xf32>
    %48 = vector.extract_strided_slice %34 {offsets = [0, 96], sizes = [128, 32], strides = [1, 1]} : vector<128x128xf32> to vector<128x32xf32>
    %49 = arith.mulf %40, %48 : vector<128x32xf32>
    %50 = arith.addf %47, %49 : vector<128x32xf32>
    %51 = math.tanh %50 : vector<128x32xf32>
    %cst_25 = arith.constant 1.000000e+00 : f32
    %52 = vector.broadcast %cst_25 : f32 to vector<128x32xf32>
    %53 = arith.subf %52, %46 : vector<128x32xf32>
    %54 = arith.mulf %53, %51 : vector<128x32xf32>
    %55 = arith.mulf %46, %24 : vector<128x32xf32>
    %56 = arith.addf %54, %55 : vector<128x32xf32>
    %57 = arith.truncf %56 : vector<128x32xf32> to vector<128x32xbf16>
    %cst_26 = arith.constant dense<0.000000e+00> : vector<128x32xf32>
    %58 = tpu.matmul %26, %57, %cst_26 {dimension_numbers = #tpu.dot_dimension_numbers<[1], [0], [0], [1], [0, 0, 1, 1], [], []>} : vector<128x128xbf16>, vector<128x32xbf16>, vector<128x32xf32> -> vector<128x32xf32>
    %59 = arith.truncf %58 : vector<128x32xf32> to vector<128x32xbf16>
    %60 = tpu.concatenate %59, %57 in 1 : vector<128x32xbf16>, vector<128x32xbf16> -> vector<128x64xbf16>
    %cst_27 = arith.constant dense<0.000000e+00> : vector<128x128xf32>
    %61 = tpu.matmul %60, %27, %cst_27 {dimension_numbers = #tpu.dot_dimension_numbers<[1], [0], [0], [1], [0, 0, 1, 1], [], []>} : vector<128x64xbf16>, vector<64x128xbf16>, vector<128x128xf32> -> vector<128x128xf32>
    %62 = vector.broadcast %2 : vector<1x128xf32> to vector<128x128xf32>
    %63 = arith.addf %61, %62 : vector<128x128xf32>
    %64 = vector.extract_strided_slice %63 {offsets = [0, 0], sizes = [128, 32], strides = [1, 1]} : vector<128x128xf32> to vector<128x32xf32>
    %65 = arith.negf %64 : vector<128x32xf32>
    %66 = math.exp %65 : vector<128x32xf32>
    %cst_28 = arith.constant 1.000000e+00 : f32
    %67 = vector.broadcast %cst_28 : f32 to vector<128x32xf32>
    %68 = arith.addf %67, %66 : vector<128x32xf32>
    %69 = arith.divf %67, %68 : vector<128x32xf32>
    %70 = vector.extract_strided_slice %63 {offsets = [0, 32], sizes = [128, 32], strides = [1, 1]} : vector<128x128xf32> to vector<128x32xf32>
    %71 = arith.negf %70 : vector<128x32xf32>
    %72 = math.exp %71 : vector<128x32xf32>
    %cst_29 = arith.constant 1.000000e+00 : f32
    %73 = vector.broadcast %cst_29 : f32 to vector<128x32xf32>
    %74 = arith.addf %73, %72 : vector<128x32xf32>
    %75 = arith.divf %73, %74 : vector<128x32xf32>
    %76 = vector.extract_strided_slice %63 {offsets = [0, 64], sizes = [128, 32], strides = [1, 1]} : vector<128x128xf32> to vector<128x32xf32>
    %77 = vector.extract_strided_slice %63 {offsets = [0, 96], sizes = [128, 32], strides = [1, 1]} : vector<128x128xf32> to vector<128x32xf32>
    %78 = arith.mulf %69, %77 : vector<128x32xf32>
    %79 = arith.addf %76, %78 : vector<128x32xf32>
    %80 = math.tanh %79 : vector<128x32xf32>
    %cst_30 = arith.constant 1.000000e+00 : f32
    %81 = vector.broadcast %cst_30 : f32 to vector<128x32xf32>
    %82 = arith.subf %81, %75 : vector<128x32xf32>
    %83 = arith.mulf %82, %80 : vector<128x32xf32>
    %84 = arith.mulf %75, %56 : vector<128x32xf32>
    %85 = arith.addf %83, %84 : vector<128x32xf32>
    %86 = arith.truncf %85 : vector<128x32xf32> to vector<128x32xbf16>
    %c0_31 = arith.constant 0 : index
    %c0_32 = arith.constant 0 : index
    %87 = vector.load %arg6[%c0_31, %c0_32] : memref<32x128xbf16, #tpu.memory_space<vmem>>, vector<32x128xbf16>
    %cst_33 = arith.constant dense<0.000000e+00> : vector<128x128xf32>
    %88 = tpu.matmul %86, %87, %cst_33 {dimension_numbers = #tpu.dot_dimension_numbers<[1], [0], [0], [1], [0, 0, 1, 1], [], []>} : vector<128x32xbf16>, vector<32x128xbf16>, vector<128x128xf32> -> vector<128x128xf32>
    %89 = vector.broadcast %3 : vector<1x128xf32> to vector<128x128xf32>
    %90 = arith.addf %88, %89 : vector<128x128xf32>
    %91 = vector.shape_cast %90 : vector<128x128xf32> to vector<16x8x128xf32>
    %c0_34 = arith.constant 0 : index
    %c0_35 = arith.constant 0 : index
    %c0_36 = arith.constant 0 : index
    %92 = vector.load %arg8[%c0_34, %c0_35, %c0_36] : memref<16x8x128xf32, #tpu.memory_space<vmem>>, vector<16x8x128xf32>
    tpu.vector_store %arg8[%c0_34, %c0_35, %c0_36], %91 {strides = array<i32>} : memref<16x8x128xf32, #tpu.memory_space<vmem>>, vector<16x8x128xf32>,
    return
  }
  func.func @transform_0(%arg0: i32) -> (i32, i32, i32) {
    %c0_i32 = arith.constant 0 : i32
    %c0_i32_0 = arith.constant 0 : i32
    %c0_i32_1 = arith.constant 0 : i32
    return %arg0, %c0_i32, %c0_i32_0 : i32, i32, i32
  }
  func.func @transform_1(%arg0: i32) -> (i32, i32, i32) {
    %c0_i32 = arith.constant 0 : i32
    %c0_i32_0 = arith.constant 0 : i32
    %c0_i32_1 = arith.constant 0 : i32
    return %arg0, %c0_i32, %c0_i32_0 : i32, i32, i32
  }
  func.func @transform_2(%arg0: i32) -> (i32, i32) {
    %c0_i32 = arith.constant 0 : i32
    %c0_i32_0 = arith.constant 0 : i32
    %c0_i32_1 = arith.constant 0 : i32
    return %c0_i32, %c0_i32_0 : i32, i32
  }
  func.func @transform_3(%arg0: i32) -> (i32, i32) {
    %c0_i32 = arith.constant 0 : i32
    %c0_i32_0 = arith.constant 0 : i32
    %c0_i32_1 = arith.constant 0 : i32
    return %c0_i32, %c0_i32_0 : i32, i32
  }
  func.func @transform_4(%arg0: i32) -> (i32, i32) {
    %c0_i32 = arith.constant 0 : i32
    %c0_i32_0 = arith.constant 0 : i32
    %c0_i32_1 = arith.constant 0 : i32
    return %c0_i32, %c0_i32_0 : i32, i32
  }
  func.func @transform_5(%arg0: i32) -> (i32, i32) {
    %c0_i32 = arith.constant 0 : i32
    %c0_i32_0 = arith.constant 0 : i32
    %c0_i32_1 = arith.constant 0 : i32
    return %c0_i32, %c0_i32_0 : i32, i32
  }
  func.func @transform_6(%arg0: i32) -> (i32, i32) {
    %c0_i32 = arith.constant 0 : i32
    %c0_i32_0 = arith.constant 0 : i32
    %c0_i32_1 = arith.constant 0 : i32
    return %c0_i32, %c0_i32_0 : i32, i32
  }
  func.func @transform_7(%arg0: i32) -> (i32, i32, i32) {
    %c0_i32 = arith.constant 0 : i32
    %c0_i32_0 = arith.constant 0 : i32
    %c0_i32_1 = arith.constant 0 : i32
    return %arg0, %c0_i32, %c0_i32_0 : i32, i32, i32
  }
}

</mosaic_0001>

<bundles_post_ra>
// kernel: tpu_custom_call.1
= control target key start
LH: loop header
LB: loop body
LE: loop exit
PB: predicated region body
PF: predicated region fallthrough
CT: control target
= control target key end

     0   :  { %12 = vsyncpa [#allocation3], 0  ;;  %s4378_s0 = inlined_call_operand.vmem [shape: bf16[32,8,16], index: 0, kind: input, shape index: {}]   ;;  %s4379_s1 = inlined_call_operand.vmem [shape: bf16[2,128,128], index: 1, kind: input, shape index: {}]   ;;  %s4380_s2 = inlined_call_operand.hbm [shape: bf16[16,32], index: 2, kind: input, shape index: {}]   ;;  %s4381_s3 = inlined_call_operand.vmem [shape: bf16[32,32], index: 3, kind: input, shape index: {}]   ;;  %s4382_s4 = inlined_call_operand.vmem [shape: bf16[64,128], index: 4, kind: input, shape index: {}]   ;;  %s4383_s5 = inlined_call_operand.vmem [shape: bf16[32,128], index: 5, kind: input, shape index: {}]   ;;  %s4384_s6 = inlined_call_operand.vmem [shape: f32[4,128], index: 6, kind: input, shape index: {}]   ;;  %s4385_s7 = inlined_call_operand.hbm [shape: f32[32,8,128], index: 7, kind: output, shape index: {}]  }
   0x1   :  { %13 = vsyncpa [#allocation4], 0 }
   0x2   :  { %15 = vsyncpa [#allocation4 + $0x1], 0  ;;  %s3364_s24 = smov 0   ;;  %s3366_s25 = smov 0  }
   0x3   :  { %s3368_s26 = smov 0   ;;  %s3370_s27 = smov 0  }
   0x4 LB: > { %s3385_s28 = sadd.s32 4294967295, %s3313_s27   ;;  %s2566_s29 = sadd.s32 4294967294, %s3313_s27   ;;  %s3313_s27 = sphi %s3370_s27, %s4401_s27   ;;  %s3309_s26 = sphi %s3368_s26, %s4400_s26   ;;  %s3305_s25 = sphi %s3366_s25, %s4399_s25   ;;  %s3301_s24 = sphi %s3364_s24, %s4398_s24  }
   0x5   : > { %s3389_s30 = sadd.s32 1, %s3313_s27   ;;  %s185_s8 = sadd.s32 1, %s3309_s26 }
   0x6   : > { %s182_s9 = ssub.s32 %s3313_s27, %s3389_s30  ;;  %p195_p0 = scmp.ne.s32.totalorder %s3309_s26, %s3305_s25 }
   0x7   : > { %p183_p1 = scmp.eq.s32.totalorder %s182_s9, 0  ;;  %p196_p2 = scmp.eq.s32.totalorder %s3385_s28, 1 }
   0x8   : > { %p201_p3 = scmp.ne.s32.totalorder %s3305_s25, %s3301_s24  ;;  %p202_p4 = scmp.eq.s32.totalorder %s2566_s29, 1 }
   0x9   : > { %s3400_s10 = scalar_select %p183_p1, %s3309_s26, %s185_s8  }
   0xa   : > { %p3402_p5 = por %p196_p2, %p195_p0  ;;  %p3406_p6 = por %p202_p4, %p201_p3 }
   0xb   : > { %p2567_p7 = scmp.ge.s32.totalorder %s3313_s27, 1  ;;  %p209_p8 = scmp.lt.s32.totalorder %s3313_s27, 3 }
   0xc   : > { %s4389_s11 = scalar_select %p3402_p5, 1, 0 }
   0xd   : > { %s4390_s12 = scalar_select %p3406_p6, 1, 0 }
   0xe   : > { %p4386_p9 = scmp.eq.s32.totalorder %s3385_s28, 0  ;;  %p3413_p10 = pnand %p2567_p7, %p209_p8 }
   0xf   : > { %s3315_s14 = smov [#allocation2]   ;;  %s3219_s19 = scalar_lea.hbm %s4380_s2, 128 }
  0x10   : > { %s4391_s13 = scalar_select %p3413_p10, 1, 0 }
  0x11   : > { %s221_s15 = sshll.u32 %s3315_s14, 4  ;;  %p2950_p11 = pneg %p3413_p10  ;;  %s222_s15 = int_to_ptr.vmem [resolvable:$true] %s221_s15 }
  0x12   : > { %p3220_p13 = scmp.ne.s32.totalorder %s4380_s2, %s3219_s19  ;;  %p3226_p3 = scmp.lt.u32.totalorder %s3219_s19, %s4380_s2 }
  0x13   : > { %p3421_p12 = pnand %p4386_p9, %p2950_p11 }
  0x15   : > { %p3221_p0 = pneg %p3421_p12 }
  0x17   : > { %p3222_p1 = pnand %p3221_p0, %p3220_p13 }
  0x19   : > { %p3223_p2 = pneg %p3222_p1 }
  0x1b   : > { %p3228_p4 = pnand %p3226_p3, %p3223_p2 }
  0x1d   : > { %3231 = shalt.err (!%p3228_p4)
}
  0x1e   : > { %s3232_s29 = scalar_lea.vmem %s222_s15, 128  ;;  %p3240_p9 = scmp.lt.s32.totalorder %s222_s15, %s222_s15 }
  0x1f   : > { %p3233_p7 = scmp.ne.s32.totalorder %s222_s15, %s3232_s29  ;;  %p3241_p6 = scmp.lt.s32.totalorder %s3232_s29, %s3232_s29 }
  0x21   : > { %p3235_p8 = pnand %p3233_p7, %p3221_p0  ;;  %p3242_p5 = por %p3241_p6, %p3240_p9 }
  0x23   : > { %p3236_p11 = pneg %p3235_p8 }
  0x25   : > { %p3243_p10 = pnand %p3242_p5, %p3236_p11 }
  0x27   : > { %3246 = shalt.err (!%p3243_p10)
}
  0x28   : > { %s3316_s8 = smov 64   ;;  %s3317_s9 = smov 4  }
  0x29   : > { %2953 = dma.hbm_to_vmem [thread:$0]  (!%p3421_p12), %s4380_s2, 128, %s222_s15, [#allocation3], %s3316_s8, %s3316_s8, %s3317_s9  }
  0x2a   : > { %p4393_p13 = scmp.ne.s32.totalorder %s4391_s13, 0 }
  0x2b   : > { %p4394_p1 = scmp.eq.s32.totalorder (!%p4393_p13), %s3385_s28, 0 }
  0x2c   : > { %266 = sbr.rel (%p4393_p13) target bundleno = 2672 (0xa70), region = 48 }
  0x33   : > { %3292 = dma.done.wait (%p4394_p1), [#allocation3], 128   ;;  %p4395_p0 = pmov %p4394_p1 }
  0x34   : > { %s2573_s18 = sshll.u32 %s3385_s28, 4  ;;  %v3001_v0 = vld [vmem:[#allocation2] sm:$0xff]   ;;  %vm388_vm0 = vcmask 130048   ;;  %v3011_v10 = vld [vmem:[%s4381_s3 + $0x8] sm:$0xff]   ;;  %vm586_vm5 = vcmask 261120   ;;  %p309_p6 = scmp.lt.s32.totalorder %s3385_s28, 1 }
  0x35   : > { %3294 = vsyncadd (%p4395_p0), [#allocation3], 4294967168  ;;  %p304_p5 = scmp.lt.s32.totalorder %s2573_s18, 31  ;;  %2770 = vmatprep.subr.bf16.mxu0 %v3001_v0  ;;  %v3010_v9 = vld [vmem:[%s4381_s3] sm:$0xff]   ;;  %s3320_s20 = smov 96  }
  0x36   : > { %2771 = vmatpush3.bf16.msra.mxu0 %v3001_v0  ;;  %2788 = vmatprep.subr.bf16.mxu1 %v3010_v9  ;;  %v3468_v11 = vld [vmem:[%s4384_s6] ss:$0 sm:$0xff]  ;;  %s310_s9 = scalar_select %p309_p6, %s3385_s28, 1 }
  0x37   : > { %s4403_s18 = smov (!%p304_p5, %s2573_s18), 31  ;;  %2789 = vmatpush3.bf16.msra.mxu1 %v3010_v9  ;;  %s300_s29 = sand.u32 1, %s3305_s25  }
  0x38   : > { %s2574_s19 = sshll.u32 %s4403_s18, 2  ;;  %2790 = vmatprep.subr.bf16.mxu1 %v3011_v10  ;;  %s2683_s14 = sshll.u32 %s310_s9, 6 }
  0x39   : > { %s307_s21 = scalar_lea.vmem %s4378_s0, %s2574_s19  ;;  %s3499_s19 = scalar_lea.vmem %s4379_s1, %s2683_s14 }
  0x3a   : > { %v3002_v1 = vld [vmem:[%s307_s21] sm:$0xff]   ;;  %v3003_v2 = vld [vmem:[%s307_s21 + $0x8] sm:$0xff]   ;;  %v3004_v3 = vld [vmem:[%s307_s21 + $0x10] sm:$0xff]   ;;  %s2572_s8 = sshll.u32 %s300_s29, 7  ;;  %s2684_s18 = sshll.u32 %s3385_s28, 11 }
  0x3b   : > { %2772 = vmatprep.mubr.msk.bf16.mxu0 %vm388_vm0, %v3002_v1  ;;  %v3005_v4 = vld [vmem:[%s307_s21 + $0x18] sm:$0xff]   ;;  %v3006_v5 = vld [vmem:[%s307_s21 + $0x20] sm:$0xff]   ;;  %v3007_v6 = vld [vmem:[%s307_s21 + $0x28] sm:$0xff]   ;;  %2791 = vmatpush3.bf16.msra.mxu1 %v3011_v10  ;;  %s4308_s17 = scalar_lea.vmem [#allocation5], %s2572_s8  ;;  %s4328_s13 = scalar_lea.hbm %s4385_s7, %s2684_s18 }
  0x3c   : > { %2773 = vmatmul.mubr.msk.bf16.vlgmr.msra.gmra.mrb[0].mxu0 %vm388_vm0, %v3003_v2  ;;  %v3008_v7 = vld [vmem:[%s307_s21 + $0x30] sm:$0xff]   ;;  %v3009_v8 = vld [vmem:[%s307_s21 + $0x38] sm:$0xff]   ;;  %s3318_s21 = smov 32   ;;  %s4337_s28 = scalar_lea.sflag [#allocation4], %s300_s29 }
  0x3d   : > { %2776 = vmatprep.mubr.msk.bf16.mxu0 %vm388_vm0, %v3004_v3  ;;  %p4396_p10 = scmp.ne.s32.totalorder %s4389_s11, 0  ;;  %s3321_s15 = smov [#allocation5]  }
  0x3e   : > { %s3251_s22 = sshll.u32 %s3321_s15, 4  ;;  %s3252_s22 = int_to_ptr.vmem [resolvable:$false] %s3251_s22 }
  0x3f   : > { %s3253_s23 = scalar_lea.vmem %s3252_s22, 4096 }
  0x44   : > { %2777 = vmatmul.mubr.msk.bf16.gmra.mrb[4].mxu0 %vm388_vm0, %v3005_v4 }
  0x45   : > { %2780 = vmatprep.mubr.msk.bf16.mxu0 %vm388_vm0, %v3006_v5 }
  0x4c   : > { %2781 = vmatmul.mubr.msk.bf16.gmra.mrb[8].mxu0 %vm388_vm0, %v3007_v6 }
  0x4d   : > { %2784 = vmatprep.mubr.msk.bf16.mxu0 %vm388_vm0, %v3008_v7 }
  0x54   : > { %2785 = vmatmul.mubr.msk.bf16.gmra.mrb[12].mxu0 %vm388_vm0, %v3009_v8 }
 0x10f   : > { %v2774_v12 = vpop.f32.mrb[0].mxu0 }
 0x110   : > { %v456_v13 = vadd.f32 %v2774_v12, %v3468_v11  ;;  %v447_v14 = vpop.f32.mrb[1].mxu0 }
 0x111   : > { %v448_v15 = vadd.f32 %v3468_v11, %v447_v14  ;;  %v2775_v16 = vpop.f32.mrb[2].mxu0 }
 0x112   : > { %v528_v17 = vmul.f32 0.01, %v456_v13  ;;  %v459_v18 = vadd.f32 %v2775_v16, %v3468_v11  ;;  %v450_v19 = vpop.f32.mrb[3].mxu0  ;;  %vm512_vm1 = vcmp.gt.f32.partialorder %v456_v13, 0.0 }
 0x113   : > { %v526_v20 = vmul.f32 0.01, %v448_v15  ;;  %v451_v21 = vadd.f32 %v3468_v11, %v450_v19  ;;  %vm510_vm3 = vcmp.gt.f32.partialorder %v448_v15, 0.0 }
 0x114   : > { %vm513_vm2 = vcmp.gt.f32.partialorder %v459_v18, 0.0  ;;  %v529_v22 = vmul.f32 0.01, %v459_v18  ;;  %v544_v24 = vsel %vm512_vm1, %v456_v13, %v528_v17 }
 0x115   : > { %v527_v23 = vmul.f32 0.01, %v451_v21  ;;  %vm511_vm4 = vcmp.gt.f32.partialorder %v451_v21, 0.0  ;;  %v542_v28 = vsel %vm510_vm3, %v448_v15, %v526_v20 }
 0x116   : > { %v545_v25 = vsel %vm513_vm2, %v459_v18, %v529_v22 }
 0x117   : > { %v559_v26 = vpack.c.bf16 %v545_v25, %v544_v24  ;;  %v2778_v27 = vpop.f32.mrb[4].mxu0  ;;  %v543_v29 = vsel %vm511_vm4, %v451_v21, %v527_v23  ;;  %v3508_v21 = vld [vmem:[%s4384_s6 + $0x1] ss:$0 sm:$0xff] }
 0x118   : > { %v472_v30 = vadd.f32 %v2778_v27, %v3468_v11  ;;  %v463_v31 = vpop.f32.mrb[5].mxu0  ;;  %v558_v32 = vpack.c.bf16 %v543_v29, %v542_v28 }
 0x119   : > { %v464_v33 = vadd.f32 %v3468_v11, %v463_v31  ;;  %v2779_v34 = vpop.f32.mrb[6].mxu0 }
 0x11a   : > { %v532_v35 = vmul.f32 0.01, %v472_v30  ;;  %v475_v36 = vadd.f32 %v2779_v34, %v3468_v11  ;;  %v466_v37 = vpop.f32.mrb[7].mxu0  ;;  %2792 = vmatprep.mubr.msk.bf16.mxu1 %vm586_vm5, %v558_v32  ;;  %vm516_vm6 = vcmp.gt.f32.partialorder %v472_v30, 0.0 }
 0x11b   : > { %v530_v38 = vmul.f32 0.01, %v464_v33  ;;  %v467_v39 = vadd.f32 %v3468_v11, %v466_v37  ;;  %2793 = vmatmul.mubr.msk.bf16.vlgmr.msra.gmra.mrb[0].mxu1 %vm586_vm5, %v559_v26  ;;  %vm514_vm7 = vcmp.gt.f32.partialorder %v464_v33, 0.0 }
 0x11c   : > { %vm517_vm8 = vcmp.gt.f32.partialorder %v475_v36, 0.0  ;;  %v533_v40 = vmul.f32 0.01, %v475_v36  ;;  %v548_v42 = vsel %vm516_vm6, %v472_v30, %v532_v35 }
 0x11d   : > { %vm515_vm9 = vcmp.gt.f32.partialorder %v467_v39, 0.0  ;;  %v531_v41 = vmul.f32 0.01, %v467_v39  ;;  %v546_v44 = vsel %vm514_vm7, %v464_v33, %v530_v38 }
 0x11e   : > { %v549_v43 = vsel %vm517_vm8, %v475_v36, %v533_v40 }
 0x11f   : > { %v561_v45 = vpack.c.bf16 %v549_v43, %v548_v42  ;;  %v547_v46 = vsel %vm515_vm9, %v467_v39, %v531_v41  ;;  %v2782_v47 = vpop.f32.mrb[8].mxu0 }
 0x120   : > { %v560_v48 = vpack.c.bf16 %v547_v46, %v546_v44  ;;  %v488_v49 = vadd.f32 %v2782_v47, %v3468_v11  ;;  %v479_v50 = vpop.f32.mrb[9].mxu0 }
 0x121   : > { %v480_v51 = vadd.f32 %v3468_v11, %v479_v50  ;;  %v2783_v52 = vpop.f32.mrb[10].mxu0 }
 0x122   : > { %v536_v53 = vmul.f32 0.01, %v488_v49  ;;  %v491_v54 = vadd.f32 %v2783_v52, %v3468_v11  ;;  %v482_v55 = vpop.f32.mrb[11].mxu0  ;;  %2796 = vmatprep.mubr.msk.bf16.mxu1 %vm586_vm5, %v560_v48  ;;  %vm520_vm10 = vcmp.gt.f32.partialorder %v488_v49, 0.0 }
 0x123   : > { %v534_v56 = vmul.f32 0.01, %v480_v51  ;;  %v483_v57 = vadd.f32 %v3468_v11, %v482_v55  ;;  %2797 = vmatmul.mubr.msk.bf16.gmra.mrb[4].mxu1 %vm586_vm5, %v561_v45  ;;  %vm518_vm11 = vcmp.gt.f32.partialorder %v480_v51, 0.0 }
 0x124   : > { %vm521_vm12 = vcmp.gt.f32.partialorder %v491_v54, 0.0  ;;  %v537_v58 = vmul.f32 0.01, %v491_v54  ;;  %v552_v60 = vsel %vm520_vm10, %v488_v49, %v536_v53 }
 0x125   : > { %vm519_vm13 = vcmp.gt.f32.partialorder %v483_v57, 0.0  ;;  %v535_v59 = vmul.f32 0.01, %v483_v57  ;;  %v550_v62 = vsel %vm518_vm11, %v480_v51, %v534_v56 }
 0x126   : > { %v553_v61 = vsel %vm521_vm12, %v491_v54, %v537_v58 }
 0x127   : > { %v563_v63 = vpack.c.bf16 %v553_v61, %v552_v60  ;;  %v551_v0 = vsel %vm519_vm13, %v483_v57, %v535_v59  ;;  %v2786_v1 = vpop.f32.mrb[12].mxu0 }
 0x128   : > { %v562_v2 = vpack.c.bf16 %v551_v0, %v550_v62  ;;  %v504_v3 = vadd.f32 %v2786_v1, %v3468_v11  ;;  %v495_v4 = vpop.f32.mrb[13].mxu0 }
 0x129   : > { %v496_v5 = vadd.f32 %v3468_v11, %v495_v4  ;;  %v2787_v6 = vpop.f32.mrb[14].mxu0 }
 0x12a   : > { %v540_v7 = vmul.f32 0.01, %v504_v3  ;;  %v507_v8 = vadd.f32 %v2787_v6, %v3468_v11  ;;  %v498_v9 = vpop.f32.mrb[15].mxu0  ;;  %2800 = vmatprep.mubr.msk.bf16.mxu1 %vm586_vm5, %v562_v2  ;;  %vm524_vm14 = vcmp.gt.f32.partialorder %v504_v3, 0.0  ;;  %v3557_v6 = vld [vmem:[%s4382_s4 + $0x8] sm:$0xff]  }
 0x12b   : > { %v538_v10 = vmul.f32 0.01, %v496_v5  ;;  %v499_v12 = vadd.f32 %v3468_v11, %v498_v9  ;;  %2801 = vmatmul.mubr.msk.bf16.gmra.mrb[8].mxu1 %vm586_vm5, %v563_v63  ;;  %vm522_vm15 = vcmp.gt.f32.partialorder %v496_v5, 0.0  ;;  %v3502_v11 = vld [vmem:[%s3499_s19] sm:$0xff]  }
 0x12c   : > { %vm525_vm0 = vcmp.gt.f32.partialorder %v507_v8, 0.0  ;;  %v541_v13 = vmul.f32 0.01, %v507_v8  ;;  %v556_v15 = vsel %vm524_vm14, %v504_v3, %v540_v7  ;;  %2824 = vmatprep.mubr.bf16.mxu0 %v3502_v11 }
 0x12d   : > { %vm523_vm1 = vcmp.gt.f32.partialorder %v499_v12, 0.0  ;;  %v539_v14 = vmul.f32 0.01, %v499_v12  ;;  %v554_v17 = vsel %vm522_vm15, %v496_v5, %v538_v10  ;;  %v3552_v5 = vld [vmem:[%s4382_s4] sm:$0xff]  }
 0x12e   : > { %v557_v16 = vsel %vm525_vm0, %v507_v8, %v541_v13  ;;  %2840 = vmatprep.subr.bf16.mxu1 %v3552_v5 }
 0x12f   : > { %v565_v18 = vpack.c.bf16 %v557_v16, %v556_v15  ;;  %v555_v19 = vsel %vm523_vm1, %v499_v12, %v539_v14  ;;  %2841 = vmatpush3.bf16.msra.mxu1 %v3552_v5 }
 0x130   : > { %v564_v20 = vpack.c.bf16 %v555_v19, %v554_v17  ;;  %2842 = vmatprep.subr.bf16.mxu1 %v3557_v6 }
 0x132   : > { %2804 = vmatprep.mubr.msk.bf16.mxu1 %vm586_vm5, %v564_v20 }
 0x133   : > { %2805 = vmatmul.mubr.msk.bf16.gmra.mrb[12].mxu1 %vm586_vm5, %v565_v18  ;;  %v3579_v18 = vld [vmem:[%s4382_s4 + $0x10] sm:$0xff]  }
 0x134   : > { %2843 = vmatpush3.bf16.msra.mxu1 %v3557_v6 }
 0x135   : > { %2844 = vmatprep.subr.bf16.mxu1 %v3579_v18 }
 0x138   : > { %2845 = vmatpush3.bf16.msra.mxu1 %v3579_v18 }
 0x1ee   : > { %v2794_v22 = vpop.f32.mrb[0].mxu1 }
 0x1ef   : > { %v645_v23 = vpop.f32.mrb[1].mxu1  ;;  %v654_v24 = vadd.f32 %v2794_v22, %v3508_v21 }
 0x1f0   : > { %v646_v25 = vadd.f32 %v3508_v21, %v645_v23  ;;  %v2795_v26 = vpop.f32.mrb[2].mxu1 }
 0x1f1   : > { %v657_v27 = vadd.f32 %v2795_v26, %v3508_v21  ;;  %v648_v28 = vpop.f32.mrb[3].mxu1  ;;  %v726_v32 = vmul.f32 0.01, %v654_v24  ;;  %vm710_vm6 = vcmp.gt.f32.partialorder %v654_v24, 0.0 }
 0x1f2   : > { %v724_v29 = vmul.f32 0.01, %v646_v25  ;;  %v649_v30 = vadd.f32 %v3508_v21, %v648_v28  ;;  %vm708_vm2 = vcmp.gt.f32.partialorder %v646_v25, 0.0 }
 0x1f3   : > { %vm711_vm3 = vcmp.gt.f32.partialorder %v657_v27, 0.0  ;;  %v727_v31 = vmul.f32 0.01, %v657_v27  ;;  %v3524_v43 = vsel %vm710_vm6, %v654_v24, %v726_v32 }
 0x1f4   : > { %vm709_vm4 = vcmp.gt.f32.partialorder %v649_v30, 0.0  ;;  %v725_v33 = vmul.f32 0.01, %v649_v30  ;;  %v3514_v35 = vsel %vm708_vm2, %v646_v25, %v724_v29 }
 0x1f5   : > { %v3518_v37 = vsel %vm711_vm3, %v657_v27, %v727_v31  ;;  %vm1017_vm3 = vcmask 523264  }
 0x1f6   : > { %v2798_v34 = vpop.f32.mrb[4].mxu1  ;;  %v3516_v36 = vsel %vm709_vm4, %v649_v30, %v725_v33  ;;  %v781_v46 = vpack.c.bf16 %v3518_v37, %v3524_v43 }
 0x1f7   : > { %v661_v38 = vpop.f32.mrb[5].mxu1  ;;  %v780_v39 = vpack.c.bf16 %v3516_v36, %v3514_v35  ;;  %v670_v40 = vadd.f32 %v2798_v34, %v3508_v21  ;;  %v3604_v34 = vld [vmem:[%s3499_s19 + $0x8] sm:$0xff]  }
 0x1f8   : > { %v662_v41 = vadd.f32 %v3508_v21, %v661_v38  ;;  %v2799_v42 = vpop.f32.mrb[6].mxu1  ;;  %v3607_v38 = vld [vmem:[%s3499_s19 + $0x10] sm:$0xff]  }
 0x1f9   : > { %v673_v44 = vadd.f32 %v2799_v42, %v3508_v21  ;;  %v664_v45 = vpop.f32.mrb[7].mxu1  ;;  %949 = vrot.lane.b32.xlu0 %v780_v39, %s3318_s21  ;;  %2808 = vmatprep.subr.bf16.mxu0 %v780_v39  ;;  %v730_v50 = vmul.f32 0.01, %v670_v40  ;;  %vm714_vm10 = vcmp.gt.f32.partialorder %v670_v40, 0.0  ;;  %v3623_v42 = vld [vmem:[%s3499_s19 + $0x30] sm:$0xff]  }
 0x1fa   : > { %v728_v47 = vmul.f32 0.01, %v662_v41  ;;  %v665_v48 = vadd.f32 %v3508_v21, %v664_v45  ;;  %2809 = vmatpush3.bf16.msra.mxu0 %v780_v39  ;;  %vm712_vm7 = vcmp.gt.f32.partialorder %v662_v41, 0.0  ;;  %v3612_v39 = vld [vmem:[%s3499_s19 + $0x18] sm:$0xff]  }
 0x1fb   : > { %vm715_vm8 = vcmp.gt.f32.partialorder %v673_v44, 0.0  ;;  %v731_v49 = vmul.f32 0.01, %v673_v44  ;;  %2810 = vmatprep.subr.bf16.mxu0 %v781_v46  ;;  %v3542_v61 = vsel %vm714_vm10, %v670_v40, %v730_v50  ;;  %v3615_v40 = vld [vmem:[%s3499_s19 + $0x20] sm:$0xff]   ;;  %v3023_v45 = vld [vmem:[%s4382_s4 + $0x18] sm:$0xff]  }
 0x1fc   : > { %vm713_vm9 = vcmp.gt.f32.partialorder %v665_v48, 0.0  ;;  %v729_v51 = vmul.f32 0.01, %v665_v48  ;;  %v3532_v53 = vsel %vm712_vm7, %v662_v41, %v728_v47  ;;  %v3620_v41 = vld [vmem:[%s3499_s19 + $0x28] sm:$0xff]   ;;  %2846 = vmatprep.subr.bf16.mxu1 %v3023_v45 }
 0x1fd   : > { %951 = vrot.lane.b32.xlu0 %v781_v46, %s3318_s21  ;;  %v3536_v55 = vsel %vm715_vm8, %v673_v44, %v731_v49  ;;  %v3628_v44 = vld [vmem:[%s3499_s19 + $0x38] sm:$0xff]   ;;  %2847 = vmatpush3.bf16.msra.mxu1 %v3023_v45  ;;  %s3319_s19 = smov 64  }
 0x1fe   : > { %v2802_v52 = vpop.f32.mrb[8].mxu1  ;;  %2811 = vmatpush3.bf16.msra.mxu0 %v781_v46  ;;  %v3534_v54 = vsel %vm713_vm9, %v665_v48, %v729_v51  ;;  %v783_v1 = vpack.c.bf16 %v3536_v55, %v3542_v61  ;;  %2896 = vmatprep.subr.bf16.mxu1 %v3552_v5 }
 0x1ff   : > { %v686_v56 = vadd.f32 %v2802_v52, %v3508_v21  ;;  %v677_v57 = vpop.f32.mrb[9].mxu1  ;;  %v782_v58 = vpack.c.bf16 %v3534_v54, %v3532_v53 }
 0x200   : > { %v678_v59 = vadd.f32 %v3508_v21, %v677_v57  ;;  %v2803_v60 = vpop.f32.mrb[10].mxu1 }
 0x201   : > { %v734_v62 = vmul.f32 0.01, %v686_v56  ;;  %v689_v63 = vadd.f32 %v2803_v60, %v3508_v21  ;;  %v680_v0 = vpop.f32.mrb[11].mxu1  ;;  %953 = vrot.lane.b32.xlu1 %v782_v58, %s3318_s21  ;;  %2812 = vmatprep.subr.bf16.mxu0 %v782_v58  ;;  %vm718_vm11 = vcmp.gt.f32.partialorder %v686_v56, 0.0 }
 0x202   : > { %v732_v2 = vmul.f32 0.01, %v678_v59  ;;  %v681_v3 = vadd.f32 %v3508_v21, %v680_v0  ;;  %2813 = vmatpush3.bf16.msra.mxu0 %v782_v58  ;;  %vm716_vm12 = vcmp.gt.f32.partialorder %v678_v59, 0.0 }
 0x203   : > { %vm719_vm13 = vcmp.gt.f32.partialorder %v689_v63, 0.0  ;;  %v735_v4 = vmul.f32 0.01, %v689_v63  ;;  %2814 = vmatprep.subr.bf16.mxu0 %v783_v1  ;;  %v3560_v8 = vsel %vm718_vm11, %v686_v56, %v734_v62 }
 0x204   : > { %vm717_vm14 = vcmp.gt.f32.partialorder %v681_v3, 0.0  ;;  %v733_v7 = vmul.f32 0.01, %v681_v3  ;;  %v3567_v13 = vsel %vm716_vm12, %v678_v59, %v732_v2 }
 0x205   : > { %955 = vrot.lane.b32.xlu1 %v783_v1, %s3318_s21  ;;  %v3562_v9 = vsel %vm719_vm13, %v689_v63, %v735_v4 }
 0x206   : > { %v2806_v10 = vpop.f32.mrb[12].mxu1  ;;  %2815 = vmatpush3.bf16.msra.mxu0 %v783_v1  ;;  %v785_v12 = vpack.c.bf16 %v3562_v9, %v3560_v8  ;;  %v3569_v14 = vsel %vm717_vm14, %v681_v3, %v733_v7 }
 0x207   : > { %v702_v15 = vadd.f32 %v2806_v10, %v3508_v21  ;;  %v693_v16 = vpop.f32.mrb[13].mxu1  ;;  %v784_v17 = vpack.c.bf16 %v3569_v14, %v3567_v13 }
 0x208   : > { %v694_v19 = vadd.f32 %v3508_v21, %v693_v16  ;;  %v2807_v20 = vpop.f32.mrb[14].mxu1 }
 0x209   : > { %v738_v22 = vmul.f32 0.01, %v702_v15  ;;  %v705_v23 = vadd.f32 %v2807_v20, %v3508_v21  ;;  %v696_v24 = vpop.f32.mrb[15].mxu1  ;;  %959 = vrot.lane.b32.xlu1 %v785_v12, %s3318_s21  ;;  %957 = vrot.lane.b32.xlu0 %v784_v17, %s3318_s21  ;;  %vm722_vm15 = vcmp.gt.f32.partialorder %v702_v15, 0.0 }
 0x20a   : > { %v736_v25 = vmul.f32 0.01, %v694_v19  ;;  %v697_v26 = vadd.f32 %v3508_v21, %v696_v24  ;;  %2816 = vmatprep.subr.bf16.mxu0 %v784_v17  ;;  %vm720_vm0 = vcmp.gt.f32.partialorder %v694_v19, 0.0 }
 0x20b   : > { %vm723_vm1 = vcmp.gt.f32.partialorder %v705_v23, 0.0  ;;  %v739_v27 = vmul.f32 0.01, %v705_v23  ;;  %2817 = vmatpush3.bf16.msra.mxu0 %v784_v17  ;;  %v3588_v29 = vsel %vm722_vm15, %v702_v15, %v738_v22 }
 0x20c   : > { %vm721_vm2 = vcmp.gt.f32.partialorder %v697_v26, 0.0  ;;  %v737_v28 = vmul.f32 0.01, %v697_v26  ;;  %2818 = vmatprep.subr.bf16.mxu0 %v785_v12  ;;  %v3594_v31 = vsel %vm720_vm0, %v694_v19, %v736_v25 }
 0x20d   : > { %v3590_v30 = vsel %vm723_vm1, %v705_v23, %v739_v27 }
 0x20e   : > { %v787_v21 = vpack.c.bf16 %v3590_v30, %v3588_v29  ;;  %v3596_v32 = vsel %vm721_vm2, %v697_v26, %v737_v28 }
 0x20f   : > { %2819 = vmatpush3.bf16.msra.mxu0 %v785_v12  ;;  %v786_v33 = vpack.c.bf16 %v3596_v32, %v3594_v31 }
 0x210   : > { %963 = vrot.lane.b32.xlu1 %v787_v21, %s3318_s21 }
 0x211   : > { %961 = vrot.lane.b32.xlu0 %v786_v33, %s3318_s21  ;;  %2820 = vmatprep.subr.bf16.mxu0 %v786_v33 }
 0x213   : > { %2821 = vmatpush3.bf16.msra.mxu0 %v786_v33 }
 0x214   : > { %2822 = vmatprep.subr.bf16.mxu0 %v787_v21 }
 0x217   : > { %2823 = vmatpush3.bf16.msra.mxu0 %v787_v21 }
 0x21a   : > { %2825 = vmatmul.mubr.bf16.vlgmr.msra.gmra.mrb[16].mxu0 %v3604_v34 }
 0x21b   : > { %2828 = vmatprep.mubr.bf16.mxu0 %v3607_v38 }
 0x222   : > { %2829 = vmatmul.mubr.bf16.gmra.mrb[20].mxu0 %v3612_v39 }
 0x223   : > { %2832 = vmatprep.mubr.bf16.mxu0 %v3615_v40 }
 0x22a   : > { %2833 = vmatmul.mubr.bf16.gmra.mrb[24].mxu0 %v3620_v41 }
 0x22b   : > { %2836 = vmatprep.mubr.bf16.mxu0 %v3623_v42 }
 0x232   : > { %2837 = vmatmul.mubr.bf16.gmra.mrb[28].mxu0 %v3628_v44 }
 0x233   : > { %2880 = vmatprep.mubr.bf16.mxu0 %v3502_v11 }
 0x26b   : > { %v950_v46 = vpop.permute.xlu0 %949 }
 0x26f   : > { %v952_v56 = vpop.permute.xlu0 %951 }
 0x273   : > { %v954_v58 = vpop.permute.xlu1 %953 }
 0x277   : > { %v956_v2 = vpop.permute.xlu1 %955 }
 0x27b   : > { %v958_v16 = vpop.permute.xlu0 %957  ;;  %v960_v17 = vpop.permute.xlu1 %959 }
 0x282   : > { %v964_v28 = vpop.permute.xlu1 %963 }
 0x283   : > { %v962_v27 = vpop.permute.xlu0 %961 }
 0x2ed   : > { %v2826_v47 = vpop.f32.mrb[16].mxu0 }
 0x2ee   : > { %v870_v48 = vpop.f32.mrb[17].mxu0 }
 0x2ef   : > { %v2827_v49 = vpop.f32.mrb[18].mxu0 }
 0x2f0   : > { %v934_v50 = vpack.c.bf16 %v2827_v49, %v2826_v47  ;;  %v873_v51 = vpop.f32.mrb[19].mxu0 }
 0x2f1   : > { %v933_v52 = vpack.c.bf16 %v873_v51, %v870_v48 }
 0x2f2   : > { %v970_v11 = vsel %vm586_vm5, %v934_v50, %v952_v56 }
 0x2f3   : > { %v967_v57 = vsel %vm586_vm5, %v933_v52, %v950_v46 }
 0x2f4   : > { %2848 = vmatprep.mubr.msk.bf16.mxu1 %vm1017_vm3, %v967_v57 }
 0x2f5   : > { %v2830_v59 = vpop.f32.mrb[20].mxu0  ;;  %2849 = vmatmul.mubr.msk.bf16.vlgmr.msra.gmra.mrb[16].mxu1 %vm1017_vm3, %v970_v11 }
 0x2f6   : > { %v886_v60 = vpop.f32.mrb[21].mxu0  ;;  %2897 = vmatpush3.bf16.msra.mxu1 %v3552_v5 }
 0x2f7   : > { %v2831_v62 = vpop.f32.mrb[22].mxu0  ;;  %2898 = vmatprep.subr.bf16.mxu1 %v3557_v6 }
 0x2f8   : > { %v936_v63 = vpack.c.bf16 %v2831_v62, %v2830_v59  ;;  %v889_v0 = vpop.f32.mrb[23].mxu0 }
 0x2f9   : > { %v935_v1 = vpack.c.bf16 %v889_v0, %v886_v60 }
 0x2fa   : > { %2899 = vmatpush3.bf16.msra.mxu1 %v3557_v6  ;;  %v976_v4 = vsel %vm586_vm5, %v936_v63, %v956_v2 }
 0x2fb   : > { %v973_v3 = vsel %vm586_vm5, %v935_v1, %v954_v58  ;;  %2900 = vmatprep.subr.bf16.mxu1 %v3579_v18 }
 0x2fc   : > { %2852 = vmatprep.mubr.msk.bf16.mxu1 %vm1017_vm3, %v973_v3 }
 0x2fd   : > { %v2834_v7 = vpop.f32.mrb[24].mxu0  ;;  %2853 = vmatmul.mubr.msk.bf16.gmra.mrb[20].mxu1 %vm1017_vm3, %v976_v4 }
 0x2fe   : > { %v902_v5 = vpop.f32.mrb[25].mxu0  ;;  %2901 = vmatpush3.bf16.msra.mxu1 %v3579_v18 }
 0x2ff   : > { %v2835_v10 = vpop.f32.mrb[26].mxu0  ;;  %2902 = vmatprep.subr.bf16.mxu1 %v3023_v45 }
 0x300   : > { %v938_v12 = vpack.c.bf16 %v2835_v10, %v2834_v7  ;;  %v905_v15 = vpop.f32.mrb[27].mxu0 }
 0x301   : > { %v937_v6 = vpack.c.bf16 %v905_v15, %v902_v5 }
 0x302   : > { %2903 = vmatpush3.bf16.msra.mxu1 %v3023_v45  ;;  %v982_v20 = vsel %vm586_vm5, %v938_v12, %v960_v17  ;;  %v3660_v45 = vld [vmem:[%s4384_s6 + $0x2] ss:$0 sm:$0xff] }
 0x303   : > { %v979_v19 = vsel %vm586_vm5, %v937_v6, %v958_v16 }
 0x304   : > { %2856 = vmatprep.mubr.msk.bf16.mxu1 %vm1017_vm3, %v979_v19 }
 0x305   : > { %v2838_v22 = vpop.f32.mrb[28].mxu0  ;;  %2857 = vmatmul.mubr.msk.bf16.gmra.mrb[24].mxu1 %vm1017_vm3, %v982_v20 }
 0x306   : > { %v918_v23 = vpop.f32.mrb[29].mxu0 }
 0x307   : > { %v2839_v24 = vpop.f32.mrb[30].mxu0 }
 0x308   : > { %v940_v18 = vpack.c.bf16 %v2839_v24, %v2838_v22  ;;  %v921_v25 = vpop.f32.mrb[31].mxu0 }
 0x309   : > { %v939_v26 = vpack.c.bf16 %v921_v25, %v918_v23 }
 0x30a   : > { %v988_v33 = vsel %vm586_vm5, %v940_v18, %v964_v28 }
 0x30b   : > { %v985_v21 = vsel %vm586_vm5, %v939_v26, %v962_v27 }
 0x30c   : > { %2860 = vmatprep.mubr.msk.bf16.mxu1 %vm1017_vm3, %v985_v21 }
 0x30d   : > { %2861 = vmatmul.mubr.msk.bf16.gmra.mrb[28].mxu1 %vm1017_vm3, %v988_v33 }
 0x3c8   : > { %v2850_v46 = vpop.f32.mrb[16].mxu1 }
 0x3c9   : > { %v1068_v47 = vpop.f32.mrb[17].mxu1  ;;  %v3671_v52 = vadd.f32 %v2850_v46, %v3660_v45 }
 0x3ca   : > { %v3663_v48 = vadd.f32 %v3660_v45, %v1068_v47  ;;  %v2851_v49 = vpop.f32.mrb[18].mxu1 }
 0x3cb   : > { %v1071_v50 = vpop.f32.mrb[19].mxu1  ;;  %v3676_v56 = vadd.f32 %v2851_v49, %v3660_v45  ;;  %v2629_v25 = vmul.f32 -1.442695, %v3671_v52 }
 0x3cc   : > { %v3666_v51 = vadd.f32 %v3660_v45, %v1071_v50  ;;  %1243 = vrot.lane.b32.xlu0 %v3663_v48, %s3318_s21  ;;  %v2627_v24 = vmul.f32 -1.442695, %v3663_v48 }
 0x3cd   : > { %v2630_v26 = vmul.f32 -1.442695, %v3676_v56 }
 0x3ce   : > { %1245 = vrot.lane.b32.xlu1 %v3666_v51, %s3318_s21  ;;  %v2628_v18 = vmul.f32 -1.442695, %v3666_v51  ;;  %3026 = vpow2.f32 %v2627_v24 }
 0x3d0   : > { %1247 = vrot.lane.b32.xlu0 %v3671_v52, %s3318_s21  ;;  %v2854_v57 = vpop.f32.mrb[20].mxu1  ;;  %3028 = vpow2.f32 %v2628_v18 }
 0x3d1   : > { %v1084_v11 = vpop.f32.mrb[21].mxu1  ;;  %v3691_v63 = vadd.f32 %v2854_v57, %v3660_v45  ;;  %3030 = vpow2.f32 %v2629_v25 }
 0x3d2   : > { %v3681_v58 = vadd.f32 %v3660_v45, %v1084_v11  ;;  %1249 = vrot.lane.b32.xlu1 %v3676_v56, %s3318_s21  ;;  %v2855_v59 = vpop.f32.mrb[22].mxu1  ;;  %3032 = vpow2.f32 %v2630_v26 }
 0x3d3   : > { %v1087_v60 = vpop.f32.mrb[23].mxu1  ;;  %v3696_v0 = vadd.f32 %v2855_v59, %v3660_v45  ;;  %v2633_v21 = vmul.f32 -1.442695, %v3691_v63 }
 0x3d4   : > { %v3686_v62 = vadd.f32 %v3660_v45, %v1087_v60  ;;  %1251 = vrot.lane.b32.xlu0 %v3681_v58, %s3318_s21  ;;  %v2631_v27 = vmul.f32 -1.442695, %v3681_v58 }
 0x3d5   : > { %v2634_v46 = vmul.f32 -1.442695, %v3696_v0 }
 0x3d6   : > { %1253 = vrot.lane.b32.xlu1 %v3686_v62, %s3318_s21  ;;  %v2632_v28 = vmul.f32 -1.442695, %v3686_v62  ;;  %3034 = vpow2.f32 %v2631_v27 }
 0x3d8   : > { %1255 = vrot.lane.b32.xlu0 %v3691_v63, %s3318_s21  ;;  %v2858_v1 = vpop.f32.mrb[24].mxu1  ;;  %v3027_v33 = vpop.eup %3026  ;;  %3036 = vpow2.f32 %v2632_v28 }
 0x3d9   : > { %v1100_v2 = vpop.f32.mrb[25].mxu1  ;;  %v3711_v10 = vadd.f32 %v2858_v1, %v3660_v45  ;;  %3038 = vpow2.f32 %v2633_v21  ;;  %v1179_v50 = vadd.f32 1.0, %v3027_v33 }
 0x3da   : > { %v3701_v3 = vadd.f32 %v3660_v45, %v1100_v2  ;;  %1257 = vrot.lane.b32.xlu1 %v3696_v0, %s3318_s21  ;;  %v2859_v4 = vpop.f32.mrb[26].mxu1  ;;  %v3029_v47 = vpop.eup %3028  ;;  %3040 = vpow2.f32 %v2634_v46 }
 0x3db   : > { %v1103_v7 = vpop.f32.mrb[27].mxu1  ;;  %v3716_v12 = vadd.f32 %v2859_v4, %v3660_v45  ;;  %v3031_v57 = vpop.eup %3030  ;;  %v1180_v59 = vadd.f32 1.0, %v3029_v47  ;;  %v2637_v1 = vmul.f32 -1.442695, %v3711_v10 }
 0x3dc   : > { %v3706_v5 = vadd.f32 %v3660_v45, %v1103_v7  ;;  %1259 = vrot.lane.b32.xlu0 %v3701_v3, %s3318_s21  ;;  %v2635_v49 = vmul.f32 -1.442695, %v3701_v3  ;;  %v3033_v60 = vpop.eup %3032  ;;  %v1181_v2 = vadd.f32 1.0, %v3031_v57 }
 0x3dd   : > { %v2638_v7 = vmul.f32 -1.442695, %v3716_v12 }
 0x3de   : > { %1261 = vrot.lane.b32.xlu1 %v3706_v5, %s3318_s21  ;;  %v2636_v11 = vmul.f32 -1.442695, %v3706_v5  ;;  %3042 = vpow2.f32 %v2635_v49 }
 0x3df   : > { %3044 = vrcp.f32 %v1179_v50 }
 0x3e0   : > { %1263 = vrot.lane.b32.xlu0 %v3711_v10, %s3318_s21  ;;  %v2862_v15 = vpop.f32.mrb[28].mxu1  ;;  %v3035_v4 = vpop.eup %3034  ;;  %3046 = vpow2.f32 %v2636_v11 }
 0x3e1   : > { %v1116_v6 = vpop.f32.mrb[29].mxu1  ;;  %v3731_v22 = vadd.f32 %v2862_v15, %v3660_v45  ;;  %v1182_v15 = vadd.f32 1.0, %v3033_v60  ;;  %3048 = vrcp.f32 %v1180_v59 }
 0x3e2   : > { %v3721_v16 = vadd.f32 %v3660_v45, %v1116_v6  ;;  %1265 = vrot.lane.b32.xlu1 %v3716_v12, %s3318_s21  ;;  %v2863_v17 = vpop.f32.mrb[30].mxu1  ;;  %v3037_v6 = vpop.eup %3036  ;;  %3050 = vpow2.f32 %v2637_v1 }
 0x3e3   : > { %v1119_v19 = vpop.f32.mrb[31].mxu1  ;;  %v3736_v23 = vadd.f32 %v2863_v17, %v3660_v45  ;;  %3052 = vrcp.f32 %v1181_v2  ;;  %v3039_v24 = vpop.eup %3038  ;;  %v1184_v25 = vadd.f32 1.0, %v3037_v6  ;;  %v2641_v27 = vmul.f32 -1.442695, %v3731_v22 }
 0x3e4   : > { %v3726_v20 = vadd.f32 %v3660_v45, %v1119_v19  ;;  %1267 = vrot.lane.b32.xlu0 %v3721_v16, %s3318_s21  ;;  %v2639_v17 = vmul.f32 -1.442695, %v3721_v16  ;;  %v1183_v19 = vadd.f32 1.0, %v3035_v4  ;;  %3054 = vpow2.f32 %v2638_v7  ;;  %v3041_v26 = vpop.eup %3040 }
 0x3e5   : > { %3056 = vrcp.f32 %v1182_v15  ;;  %v1185_v28 = vadd.f32 1.0, %v3039_v24  ;;  %v2642_v33 = vmul.f32 -1.442695, %v3736_v23  ;;  %v1186_v47 = vadd.f32 1.0, %v3041_v26 }
 0x3e6   : > { %1269 = vrot.lane.b32.xlu1 %v3726_v20, %s3318_s21  ;;  %v2640_v18 = vmul.f32 -1.442695, %v3726_v20  ;;  %3058 = vpow2.f32 %v2639_v17 }
 0x3e7   : > { %3060 = vrcp.f32 %v1183_v19 }
 0x3e8   : > { %1271 = vrot.lane.b32.xlu0 %v3731_v22, %s3318_s21  ;;  %v3043_v21 = vpop.eup %3042  ;;  %3062 = vpow2.f32 %v2640_v18 }
 0x3e9   : > { %v3758_v46 = vpop.eup %3044  ;;  %3064 = vrcp.f32 %v1184_v25  ;;  %v1187_v59 = vadd.f32 1.0, %v3043_v21 }
 0x3ea   : > { %1273 = vrot.lane.b32.xlu1 %v3736_v23, %s3318_s21  ;;  %v3047_v50 = vpop.eup %3046  ;;  %3066 = vpow2.f32 %v2641_v27 }
 0x3eb   : > { %v3761_v11 = vpop.eup %3048  ;;  %3068 = vrcp.f32 %v1185_v28  ;;  %v1188_v7 = vadd.f32 1.0, %v3047_v50 }
 0x3ec   : > { %v3051_v1 = vpop.eup %3050  ;;  %3070 = vpow2.f32 %v2642_v33 }
 0x3ed   : > { %v3765_v4 = vpop.eup %3052  ;;  %3072 = vrcp.f32 %v1186_v47  ;;  %v1189_v24 = vadd.f32 1.0, %v3051_v1 }
 0x3ee   : > { %v3055_v6 = vpop.eup %3054  ;;  %3074 = vrcp.f32 %v1187_v59 }
 0x3ef   : > { %v3769_v19 = vpop.eup %3056  ;;  %v1190_v28 = vadd.f32 1.0, %v3055_v6  ;;  %3076 = vrcp.f32 %v1188_v7 }
 0x3f0   : > { %v3059_v25 = vpop.eup %3058  ;;  %3078 = vrcp.f32 %v1189_v24 }
 0x3f1   : > { %v3773_v27 = vpop.eup %3060  ;;  %v1191_v50 = vadd.f32 1.0, %v3059_v25  ;;  %3080 = vrcp.f32 %v1190_v28 }
 0x3f2   : > { %v3063_v33 = vpop.eup %3062 }
 0x3f3   : > { %3082 = vrcp.f32 %v1191_v50 }
 0x43e   : > { %v1244_v49 = vpop.permute.xlu0 %1243 }
 0x43f   : > { %v1291_v57 = vmul.f32 %v3758_v46, %v1244_v49  ;;  %v3777_v49 = vpop.eup %3064 }
 0x440   : > { %v1246_v60 = vpop.permute.xlu1 %1245  ;;  %v3067_v59 = vpop.eup %3066 }
 0x441   : > { %v1292_v2 = vmul.f32 %v3761_v11, %v1246_v60  ;;  %1323 = vrot.lane.b32.xlu0 %v1291_v57, %s3319_s19  ;;  %v3781_v1 = vpop.eup %3068  ;;  %v1193_v24 = vadd.f32 1.0, %v3067_v59 }
 0x442   : > { %v1248_v15 = vpop.permute.xlu0 %1247 }
 0x443   : > { %v1293_v17 = vmul.f32 %v3765_v4, %v1248_v15  ;;  %1325 = vrot.lane.b32.xlu1 %v1292_v2, %s3319_s19  ;;  %v1192_v2 = vadd.f32 1.0, %v3063_v33  ;;  %v3071_v15 = vpop.eup %3070 }
 0x444   : > { %v1250_v18 = vpop.permute.xlu1 %1249 }
 0x445   : > { %v1294_v26 = vmul.f32 %v3769_v19, %v1250_v18  ;;  %1327 = vrot.lane.b32.xlu0 %v1293_v17, %s3319_s19  ;;  %v3785_v17 = vpop.eup %3072  ;;  %3084 = vrcp.f32 %v1192_v2 }
 0x446   : > { %v1252_v21 = vpop.permute.xlu0 %1251  ;;  %3086 = vrcp.f32 %v1193_v24 }
 0x447   : > { %v1295_v47 = vmul.f32 %v3773_v27, %v1252_v21  ;;  %1329 = vrot.lane.b32.xlu1 %v1294_v26, %s3319_s19  ;;  %v3789_v26 = vpop.eup %3074  ;;  %v1194_v21 = vadd.f32 1.0, %v3071_v15 }
 0x448   : > { %v1254_v57 = vpop.permute.xlu1 %1253 }
 0x449   : > { %v1296_v60 = vmul.f32 %v3777_v49, %v1254_v57  ;;  %1331 = vrot.lane.b32.xlu0 %v1295_v47, %s3319_s19  ;;  %v3793_v47 = vpop.eup %3076  ;;  %3088 = vrcp.f32 %v1194_v21 }
 0x44a   : > { %v1256_v7 = vpop.permute.xlu0 %1255  ;;  %v3797_v59 = vpop.eup %3078 }
 0x44b   : > { %v1297_v6 = vmul.f32 %v3781_v1, %v1256_v7  ;;  %1333 = vrot.lane.b32.xlu1 %v1296_v60, %s3319_s19  ;;  %v3801_v2 = vpop.eup %3080 }
 0x44c   : > { %v1258_v18 = vpop.permute.xlu1 %1257  ;;  %v3805_v24 = vpop.eup %3082 }
 0x44d   : > { %v1298_v25 = vmul.f32 %v3785_v17, %v1258_v18  ;;  %1335 = vrot.lane.b32.xlu0 %v1297_v6, %s3319_s19 }
 0x44e   : > { %v1260_v28 = vpop.permute.xlu0 %1259 }
 0x44f   : > { %v1299_v33 = vmul.f32 %v3789_v26, %v1260_v28  ;;  %1337 = vrot.lane.b32.xlu1 %v1298_v25, %s3319_s19  ;;  %v3809_v21 = vpop.eup %3084 }
 0x450   : > { %v1262_v57 = vpop.permute.xlu1 %1261 }
 0x451   : > { %v1300_v50 = vmul.f32 %v3793_v47, %v1262_v57  ;;  %1339 = vrot.lane.b32.xlu0 %v1299_v33, %s3319_s19  ;;  %v3813_v57 = vpop.eup %3086 }
 0x452   : > { %v1264_v60 = vpop.permute.xlu0 %1263 }
 0x453   : > { %v1301_v7 = vmul.f32 %v3797_v59, %v1264_v60  ;;  %1341 = vrot.lane.b32.xlu1 %v1300_v50, %s3319_s19 }
 0x454   : > { %v1266_v15 = vpop.permute.xlu1 %1265 }
 0x455   : > { %v1302_v6 = vmul.f32 %v3801_v2, %v1266_v15  ;;  %1343 = vrot.lane.b32.xlu0 %v1301_v7, %s3319_s19  ;;  %v3817_v7 = vpop.eup %3088 }
 0x456   : > { %v1268_v18 = vpop.permute.xlu0 %1267 }
 0x457   : > { %v1303_v25 = vmul.f32 %v3805_v24, %v1268_v18  ;;  %1345 = vrot.lane.b32.xlu1 %v1302_v6, %s3319_s19 }
 0x458   : > { %v1270_v28 = vpop.permute.xlu1 %1269 }
 0x459   : > { %v1304_v33 = vmul.f32 %v3809_v21, %v1270_v28  ;;  %1347 = vrot.lane.b32.xlu0 %v1303_v25, %s3319_s19 }
 0x45a   : > { %v1272_v50 = vpop.permute.xlu0 %1271 }
 0x45b   : > { %v1305_v60 = vmul.f32 %v3813_v57, %v1272_v50  ;;  %1349 = vrot.lane.b32.xlu1 %v1304_v33, %s3319_s19 }
 0x45c   : > { %v1274_v15 = vpop.permute.xlu1 %1273 }
 0x45d   : > { %v1306_v18 = vmul.f32 %v3817_v7, %v1274_v15  ;;  %1351 = vrot.lane.b32.xlu0 %v1305_v60, %s3319_s19 }
 0x45f   : > { %1353 = vrot.lane.b32.xlu1 %v1306_v18, %s3319_s19 }
 0x461   : > { %1515 = vrot.lane.b32.xlu0 %v3514_v35, %s3318_s21 }
 0x463   : > { %1517 = vrot.lane.b32.xlu1 %v3516_v36, %s3318_s21 }
 0x465   : > { %1519 = vrot.lane.b32.xlu0 %v3524_v43, %s3318_s21 }
 0x467   : > { %1521 = vrot.lane.b32.xlu1 %v3518_v37, %s3318_s21 }
 0x469   : > { %1523 = vrot.lane.b32.xlu0 %v3532_v53, %s3318_s21 }
 0x46b   : > { %1525 = vrot.lane.b32.xlu1 %v3534_v54, %s3318_s21 }
 0x46d   : > { %1527 = vrot.lane.b32.xlu0 %v3542_v61, %s3318_s21 }
 0x46f   : > { %1529 = vrot.lane.b32.xlu1 %v3536_v55, %s3318_s21 }
 0x471   : > { %1531 = vrot.lane.b32.xlu0 %v3567_v13, %s3318_s21 }
 0x473   : > { %1533 = vrot.lane.b32.xlu1 %v3569_v14, %s3318_s21 }
 0x475   : > { %1535 = vrot.lane.b32.xlu0 %v3560_v8, %s3318_s21 }
 0x477   : > { %1537 = vrot.lane.b32.xlu1 %v3562_v9, %s3318_s21 }
 0x479   : > { %1539 = vrot.lane.b32.xlu0 %v3594_v31, %s3318_s21 }
 0x47b   : > { %1541 = vrot.lane.b32.xlu1 %v3596_v32, %s3318_s21 }
 0x4b3   : > { %v1324_v35 = vpop.permute.xlu0 %1323 }
 0x4b4   : > { %v1371_v54 = vadd.f32 %v1324_v35, %v3663_v48 }
 0x4b5   : > { %v1326_v36 = vpop.permute.xlu1 %1325 }
 0x4b6   : > { %v1372_v8 = vadd.f32 %v1326_v36, %v3666_v51 }
 0x4b7   : > { %v1328_v37 = vpop.permute.xlu0 %1327 }
 0x4b8   : > { %v1373_v43 = vadd.f32 %v1328_v37, %v3671_v52 }
 0x4b9   : > { %v1330_v53 = vpop.permute.xlu1 %1329 }
 0x4ba   : > { %3090 = vtanh.f32 %v1373_v43  ;;  %v1374_v55 = vadd.f32 %v1330_v53, %v3676_v56 }
 0x4bb   : > { %v1332_v61 = vpop.permute.xlu0 %1331 }
 0x4bc   : > { %3092 = vtanh.f32 %v1374_v55  ;;  %v1375_v32 = vadd.f32 %v1332_v61, %v3681_v58 }
 0x4bd   : > { %v1334_v9 = vpop.permute.xlu1 %1333  ;;  %3094 = vtanh.f32 %v1371_v54 }
 0x4be   : > { %3096 = vtanh.f32 %v1372_v8  ;;  %v1376_v56 = vadd.f32 %v1334_v9, %v3686_v62 }
 0x4bf   : > { %v1336_v13 = vpop.permute.xlu0 %1335 }
 0x4c0   : > { %v1377_v14 = vadd.f32 %v1336_v13, %v3691_v63 }
 0x4c1   : > { %v1338_v31 = vpop.permute.xlu1 %1337 }
 0x4c2   : > { %3098 = vtanh.f32 %v1377_v14  ;;  %v1378_v52 = vadd.f32 %v1338_v31, %v3696_v0 }
 0x4c3   : > { %v1340_v48 = vpop.permute.xlu0 %1339 }
 0x4c4   : > { %v3091_v6 = vpop.eup %3090  ;;  %3100 = vtanh.f32 %v1378_v52  ;;  %v1379_v62 = vadd.f32 %v1340_v48, %v3701_v3 }
 0x4c5   : > { %v1342_v25 = vpop.permute.xlu1 %1341  ;;  %1439 = vrot.lane.b32.xlu0 %v3091_v6, %s3320_s20  ;;  %3102 = vtanh.f32 %v1375_v32 }
 0x4c6   : > { %v3093_v51 = vpop.eup %3092  ;;  %3104 = vtanh.f32 %v1376_v56  ;;  %v1380_v18 = vadd.f32 %v1342_v25, %v3706_v5 }
 0x4c7   : > { %1441 = vrot.lane.b32.xlu1 %v3093_v51, %s3320_s20  ;;  %v1344_v63 = vpop.permute.xlu0 %1343  ;;  %v3095_v28 = vpop.eup %3094 }
 0x4c8   : > { %v1381_v58 = vadd.f32 %v1344_v63, %v3711_v10  ;;  %v3097_v0 = vpop.eup %3096 }
 0x4c9   : > { %v1346_v33 = vpop.permute.xlu1 %1345  ;;  %1435 = vrot.lane.b32.xlu0 %v3095_v28, %s3320_s20 }
 0x4ca   : > { %3106 = vtanh.f32 %v1381_v58  ;;  %v1382_v50 = vadd.f32 %v1346_v33, %v3716_v12 }
 0x4cb   : > { %1437 = vrot.lane.b32.xlu1 %v3097_v0, %s3320_s20  ;;  %v1348_v60 = vpop.permute.xlu0 %1347 }
 0x4cc   : > { %v3099_v15 = vpop.eup %3098  ;;  %3108 = vtanh.f32 %v1382_v50  ;;  %v1383_v53 = vadd.f32 %v1348_v60, %v3721_v16 }
 0x4cd   : > { %v1350_v35 = vpop.permute.xlu1 %1349  ;;  %1447 = vrot.lane.b32.xlu0 %v3099_v15, %s3320_s20  ;;  %3110 = vtanh.f32 %v1379_v62  ;;  %v1406_v62 = vsub.f32 1.0, %v3769_v19 }
 0x4ce   : > { %v3101_v10 = vpop.eup %3100  ;;  %3112 = vtanh.f32 %v1380_v18  ;;  %v1384_v55 = vadd.f32 %v1350_v35, %v3726_v20  ;;  %v1403_v35 = vsub.f32 1.0, %v3758_v46 }
 0x4cf   : > { %1449 = vrot.lane.b32.xlu1 %v3101_v10, %s3320_s20  ;;  %v1352_v36 = vpop.permute.xlu0 %1351  ;;  %v3103_v37 = vpop.eup %3102 }
 0x4d0   : > { %v1385_v3 = vadd.f32 %v1352_v36, %v3731_v22  ;;  %v3105_v43 = vpop.eup %3104 }
 0x4d1   : > { %v1354_v12 = vpop.permute.xlu1 %1353  ;;  %1443 = vrot.lane.b32.xlu0 %v3103_v37, %s3320_s20 }
 0x4d2   : > { %3114 = vtanh.f32 %v1385_v3  ;;  %v1386_v5 = vadd.f32 %v1354_v12, %v3736_v23  ;;  %v1404_v12 = vsub.f32 1.0, %v3761_v11 }
 0x4d3   : > { %1445 = vrot.lane.b32.xlu1 %v3105_v43, %s3320_s20  ;;  %v1516_v13 = vpop.permute.xlu0 %1515 }
 0x4d4   : > { %v3107_v54 = vpop.eup %3106  ;;  %3116 = vtanh.f32 %v1386_v5  ;;  %v1563_v5 = vmul.f32 %v3758_v46, %v1516_v13  ;;  %v1407_v46 = vsub.f32 1.0, %v3773_v27 }
 0x4d5   : > { %1455 = vrot.lane.b32.xlu0 %v3107_v54, %s3320_s20  ;;  %3118 = vtanh.f32 %v1383_v53  ;;  %v1518_v14 = vpop.permute.xlu1 %1517  ;;  %v1409_v53 = vsub.f32 1.0, %v3781_v1 }
 0x4d6   : > { %v3109_v61 = vpop.eup %3108  ;;  %3120 = vtanh.f32 %v1384_v55 }
 0x4d7   : > { %1457 = vrot.lane.b32.xlu1 %v3109_v61, %s3320_s20  ;;  %v3111_v22 = vpop.eup %3110  ;;  %v1520_v31 = vpop.permute.xlu0 %1519 }
 0x4d8   : > { %v3113_v16 = vpop.eup %3112  ;;  %v1565_v60 = vmul.f32 %v3765_v4, %v1520_v31 }
 0x4d9   : > { %1451 = vrot.lane.b32.xlu0 %v3111_v22, %s3320_s20  ;;  %v1522_v32 = vpop.permute.xlu1 %1521 }
 0x4da   : > { %v1566_v15 = vmul.f32 %v3769_v19, %v1522_v32 }
 0x4db   : > { %1453 = vrot.lane.b32.xlu1 %v3113_v16, %s3320_s20  ;;  %v1524_v52 = vpop.permute.xlu0 %1523 }
 0x4dc   : > { %v3115_v23 = vpop.eup %3114 }
 0x4dd   : > { %1463 = vrot.lane.b32.xlu0 %v3115_v23, %s3320_s20  ;;  %v1526_v48 = vpop.permute.xlu1 %1525  ;;  %v1410_v23 = vsub.f32 1.0, %v3785_v17 }
 0x4de   : > { %v3117_v8 = vpop.eup %3116 }
 0x4df   : > { %1465 = vrot.lane.b32.xlu1 %v3117_v8, %s3320_s20  ;;  %v3119_v20 = vpop.eup %3118  ;;  %v1528_v6 = vpop.permute.xlu0 %1527 }
 0x4e0   : > { %v3121_v9 = vpop.eup %3120 }
 0x4e1   : > { %1459 = vrot.lane.b32.xlu0 %v3119_v20, %s3320_s20  ;;  %v1530_v56 = vpop.permute.xlu1 %1529 }
 0x4e2   : > { %v1570_v20 = vmul.f32 %v3785_v17, %v1530_v56  ;;  %v1567_v17 = vmul.f32 %v3773_v27, %v1524_v52  ;;  %v1411_v27 = vsub.f32 1.0, %v3789_v26 }
 0x4e3   : > { %1461 = vrot.lane.b32.xlu1 %v3121_v9, %s3320_s20  ;;  %v3886_v25 = vpop.permute.xlu0 %1531 }
 0x4e5   : > { %1543 = vrot.lane.b32.xlu0 %v3588_v29, %s3318_s21  ;;  %v3888_v51 = vpop.permute.xlu1 %1533 }
 0x4e7   : > { %1545 = vrot.lane.b32.xlu1 %v3590_v30, %s3318_s21  ;;  %v1536_v63 = vpop.permute.xlu0 %1535  ;;  %v1405_v30 = vsub.f32 1.0, %v3765_v4  ;;  %v1564_v4 = vmul.f32 %v3761_v11, %v1518_v14  ;;  %v1569_v11 = vmul.f32 %v3781_v1, %v1528_v6  ;;  %v1413_v1 = vsub.f32 1.0, %v3797_v59 }
 0x4e8   : > { %v1568_v6 = vmul.f32 %v3777_v49, %v1526_v48 }
 0x4e9   : > { %v1538_v28 = vpop.permute.xlu1 %1537 }
 0x4ea   : > { %v1574_v52 = vmul.f32 %v3801_v2, %v1538_v28 }
 0x4eb   : > { %v3890_v58 = vpop.permute.xlu0 %1539 }
 0x4ed   : > { %v3892_v29 = vpop.permute.xlu1 %1541 }
 0x537   : > { %v1440_v33 = vpop.permute.xlu0 %1439 }
 0x538   : > { %v1485_v0 = vmul.f32 %v1440_v33, %v1405_v30  ;;  %v1408_v33 = vsub.f32 1.0, %v3777_v49  ;;  %v1573_v49 = vmul.f32 %v3797_v59, %v1536_v63  ;;  %v1571_v59 = vmul.f32 %v3789_v26, %v3886_v25 }
 0x539   : > { %v1442_v50 = vpop.permute.xlu1 %1441 }
 0x53a   : > { %v1486_v18 = vmul.f32 %v1442_v50, %v1406_v62  ;;  %v3899_v36 = vadd.f32 %v1565_v60, %v1485_v0 }
 0x53b   : > { %v1436_v10 = vpop.permute.xlu0 %1435 }
 0x53c   : > { %v3901_v37 = vadd.f32 %v1566_v15, %v1486_v18  ;;  %v1483_v3 = vmul.f32 %v1436_v10, %v1403_v35  ;;  %v1414_v35 = vsub.f32 1.0, %v3801_v2  ;;  %v1572_v2 = vmul.f32 %v3793_v47, %v3888_v51 }
 0x53d   : > { %v1438_v43 = vpop.permute.xlu1 %1437  ;;  %v1416_v51 = vsub.f32 1.0, %v3809_v21 }
 0x53e   : > { %v1484_v54 = vmul.f32 %v1438_v43, %v1404_v12  ;;  %v3909_v19 = vpack.c.bf16 %v3901_v37, %v3899_v36  ;;  %v3911_v61 = vadd.f32 %v1563_v5, %v1483_v3 }
 0x53f   : > { %v1448_v55 = vpop.permute.xlu0 %1447 }
 0x540   : > { %v3913_v22 = vadd.f32 %v1564_v4, %v1484_v54  ;;  %v1489_v16 = vmul.f32 %v1448_v55, %v1409_v53  ;;  %1613 = vrot.lane.b32.xlu1 %v3909_v19, %s3320_s20  ;;  %v1412_v4 = vsub.f32 1.0, %v3793_v47 }
 0x541   : > { %v1450_v8 = vpop.permute.xlu1 %1449 }
 0x542   : > { %v1490_v9 = vmul.f32 %v1450_v8, %v1410_v23  ;;  %v3923_v13 = vpack.c.bf16 %v3913_v22, %v3911_v61  ;;  %v3925_v31 = vadd.f32 %v1569_v11, %v1489_v16 }
 0x543   : > { %v1444_v14 = vpop.permute.xlu0 %1443 }
 0x544   : > { %v3927_v32 = vadd.f32 %v1570_v20, %v1490_v9  ;;  %v1487_v30 = vmul.f32 %v1444_v14, %v1407_v46  ;;  %1611 = vrot.lane.b32.xlu0 %v3923_v13, %s3320_s20  ;;  %v1415_v46 = vsub.f32 1.0, %v3805_v24  ;;  %v1575_v20 = vmul.f32 %v3805_v24, %v3890_v58 }
 0x545   : > { %v1446_v0 = vpop.permute.xlu1 %1445  ;;  %v1576_v9 = vmul.f32 %v3809_v21, %v3892_v29 }
 0x546   : > { %v1488_v56 = vmul.f32 %v1446_v0, %v1408_v33  ;;  %v3937_v62 = vpack.c.bf16 %v3927_v32, %v3925_v31  ;;  %v3939_v60 = vadd.f32 %v1567_v17, %v1487_v30  ;;  %v1417_v30 = vsub.f32 1.0, %v3813_v57 }
 0x547   : > { %v1456_v50 = vpop.permute.xlu0 %1455  ;;  %v1418_v0 = vsub.f32 1.0, %v3817_v7 }
 0x548   : > { %v3941_v15 = vadd.f32 %v1568_v6, %v1488_v56  ;;  %v1493_v18 = vmul.f32 %v1456_v50, %v1413_v1  ;;  %1617 = vrot.lane.b32.xlu1 %v3937_v62, %s3320_s20 }
 0x549   : > { %v1458_v10 = vpop.permute.xlu1 %1457 }
 0x54a   : > { %v1494_v48 = vmul.f32 %v1458_v10, %v1414_v35  ;;  %v3951_v3 = vpack.c.bf16 %v3941_v15, %v3939_v60  ;;  %v3953_v43 = vadd.f32 %v1573_v49, %v1493_v18 }
 0x54b   : > { %v1452_v12 = vpop.permute.xlu0 %1451 }
 0x54c   : > { %v3955_v53 = vadd.f32 %v1574_v52, %v1494_v48  ;;  %v1491_v5 = vmul.f32 %v1452_v12, %v1411_v27  ;;  %1615 = vrot.lane.b32.xlu0 %v3951_v3, %s3320_s20 }
 0x54d   : > { %v1454_v54 = vpop.permute.xlu1 %1453 }
 0x54e   : > { %v1492_v63 = vmul.f32 %v1454_v54, %v1412_v4  ;;  %v3966_v28 = vpack.c.bf16 %v3955_v53, %v3953_v43  ;;  %v3968_v16 = vadd.f32 %v1571_v59, %v1491_v5 }
 0x54f   : > { %v1464_v55 = vpop.permute.xlu0 %1463 }
 0x550   : > { %v3970_v23 = vadd.f32 %v1572_v2, %v1492_v63  ;;  %1621 = vrot.lane.b32.xlu1 %v3966_v28, %s3320_s20  ;;  %v1497_v50 = vmul.f32 %v1464_v55, %v1417_v30 }
 0x551   : > { %v1466_v8 = vpop.permute.xlu1 %1465 }
 0x552   : > { %v3977_v26 = vpack.c.bf16 %v3970_v23, %v3968_v16  ;;  %v1498_v18 = vmul.f32 %v1466_v8, %v1418_v0 }
 0x553   : > { %v1460_v47 = vpop.permute.xlu0 %1459 }
 0x554   : > { %v1495_v25 = vmul.f32 %v1460_v47, %v1415_v46  ;;  %1619 = vrot.lane.b32.xlu0 %v3977_v26, %s3320_s20 }
 0x555   : > { %v1462_v11 = vpop.permute.xlu1 %1461 }
 0x556   : > { %v1496_v14 = vmul.f32 %v1462_v11, %v1416_v51  ;;  %v3988_v1 = vadd.f32 %v1575_v20, %v1495_v25 }
 0x557   : > { %v1544_v33 = vpop.permute.xlu0 %1543 }
 0x558   : > { %v3990_v17 = vadd.f32 %v1576_v9, %v1496_v14  ;;  %v1577_v6 = vmul.f32 %v3813_v57, %v1544_v33 }
 0x559   : > { %v1546_v56 = vpop.permute.xlu1 %1545 }
 0x55a   : > { %v1578_v24 = vmul.f32 %v3817_v7, %v1546_v56  ;;  %v3996_v21 = vpack.c.bf16 %v3990_v17, %v3988_v1  ;;  %v3998_v58 = vadd.f32 %v1577_v6, %v1497_v50 }
 0x55c   : > { %v4000_v29 = vadd.f32 %v1578_v24, %v1498_v18  ;;  %1623 = vrot.lane.b32.xlu0 %v3996_v21, %s3320_s20 }
 0x55e   : > { %v4006_v35 = vpack.c.bf16 %v4000_v29, %v3998_v58 }
 0x560   : > { %1625 = vrot.lane.b32.xlu1 %v4006_v35, %s3320_s20 }
 0x5b2   : > { %v1614_v7 = vpop.permute.xlu1 %1613 }
 0x5b6   : > { %v1612_v57 = vpop.permute.xlu0 %1611 }
 0x5b7   : > { %2864 = vmatprep.subr.bf16.mxu0 %v1612_v57 }
 0x5b8   : > { %2865 = vmatpush3.bf16.msra.mxu0 %v1612_v57 }
 0x5b9   : > { %2866 = vmatprep.subr.bf16.mxu0 %v1614_v7 }
 0x5ba   : > { %v1618_v27 = vpop.permute.xlu1 %1617 }
 0x5bc   : > { %2867 = vmatpush3.bf16.msra.mxu0 %v1614_v7 }
 0x5be   : > { %v1616_v10 = vpop.permute.xlu0 %1615 }
 0x5bf   : > { %2868 = vmatprep.subr.bf16.mxu0 %v1616_v10 }
 0x5c0   : > { %2869 = vmatpush3.bf16.msra.mxu0 %v1616_v10 }
 0x5c1   : > { %2870 = vmatprep.subr.bf16.mxu0 %v1618_v27 }
 0x5c2   : > { %v1622_v52 = vpop.permute.xlu1 %1621 }
 0x5c4   : > { %2871 = vmatpush3.bf16.msra.mxu0 %v1618_v27 }
 0x5c6   : > { %v1620_v49 = vpop.permute.xlu0 %1619 }
 0x5c7   : > { %2872 = vmatprep.subr.bf16.mxu0 %v1620_v49 }
 0x5c8   : > { %2873 = vmatpush3.bf16.msra.mxu0 %v1620_v49 }
 0x5c9   : > { %2874 = vmatprep.subr.bf16.mxu0 %v1622_v52 }
 0x5cc   : > { %2875 = vmatpush3.bf16.msra.mxu0 %v1622_v52 }
 0x5ce   : > { %v1624_v48 = vpop.permute.xlu0 %1623 }
 0x5cf   : > { %2876 = vmatprep.subr.bf16.mxu0 %v1624_v48 }
 0x5d0   : > { %2877 = vmatpush3.bf16.msra.mxu0 %v1624_v48 }
 0x5d2   : > { %v1626_v12 = vpop.permute.xlu1 %1625 }
 0x5d3   : > { %2878 = vmatprep.subr.bf16.mxu0 %v1626_v12 }
 0x5d4   : > { %2879 = vmatpush3.bf16.msra.mxu0 %v1626_v12 }
 0x5d7   : > { %2881 = vmatmul.mubr.bf16.vlgmr.msra.gmra.mrb[32].mxu0 %v3604_v34 }
 0x5d8   : > { %2884 = vmatprep.mubr.bf16.mxu0 %v3607_v38 }
 0x5df   : > { %2885 = vmatmul.mubr.bf16.gmra.mrb[36].mxu0 %v3612_v39 }
 0x5e0   : > { %2888 = vmatprep.mubr.bf16.mxu0 %v3615_v40 }
 0x5e7   : > { %2889 = vmatmul.mubr.bf16.gmra.mrb[40].mxu0 %v3620_v41 }
 0x5e8   : > { %2892 = vmatprep.mubr.bf16.mxu0 %v3623_v42 }
 0x5ef   : > { %2893 = vmatmul.mubr.bf16.gmra.mrb[44].mxu0 %v3628_v44 }
 0x6aa   : > { %v2882_v5 = vpop.f32.mrb[32].mxu0 }
 0x6ab   : > { %v1669_v4 = vpop.f32.mrb[33].mxu0 }
 0x6ac   : > { %v2883_v54 = vpop.f32.mrb[34].mxu0 }
 0x6ad   : > { %v1733_v59 = vpack.c.bf16 %v2883_v54, %v2882_v5  ;;  %v1672_v2 = vpop.f32.mrb[35].mxu0 }
 0x6ae   : > { %v1732_v63 = vpack.c.bf16 %v1672_v2, %v1669_v4 }
 0x6af   : > { %v1745_v38 = vsel %vm586_vm5, %v1733_v59, %v3909_v19 }
 0x6b0   : > { %v1742_v34 = vsel %vm586_vm5, %v1732_v63, %v3923_v13 }
 0x6b1   : > { %2904 = vmatprep.mubr.msk.bf16.mxu1 %vm1017_vm3, %v1742_v34 }
 0x6b2   : > { %v2886_v39 = vpop.f32.mrb[36].mxu0  ;;  %2905 = vmatmul.mubr.msk.bf16.vlgmr.msra.gmra.mrb[32].mxu1 %vm1017_vm3, %v1745_v38 }
 0x6b3   : > { %v1685_v40 = vpop.f32.mrb[37].mxu0 }
 0x6b4   : > { %v2887_v41 = vpop.f32.mrb[38].mxu0 }
 0x6b5   : > { %v1735_v42 = vpack.c.bf16 %v2887_v41, %v2886_v39  ;;  %v1688_v44 = vpop.f32.mrb[39].mxu0 }
 0x6b6   : > { %v1734_v55 = vpack.c.bf16 %v1688_v44, %v1685_v40 }
 0x6b7   : > { %v1751_v13 = vsel %vm586_vm5, %v1735_v42, %v3937_v62  ;;  %v3218_v42 = vld [vmem:[%s4384_s6 + $0x2] ss:$0 sm:$0xff] }
 0x6b8   : > { %v1748_v8 = vsel %vm586_vm5, %v1734_v55, %v3951_v3 }
 0x6b9   : > { %2908 = vmatprep.mubr.msk.bf16.mxu1 %vm1017_vm3, %v1748_v8 }
 0x6ba   : > { %v2890_v46 = vpop.f32.mrb[40].mxu0  ;;  %2909 = vmatmul.mubr.msk.bf16.gmra.mrb[36].mxu1 %vm1017_vm3, %v1751_v13 }
 0x6bb   : > { %v1701_v19 = vpop.f32.mrb[41].mxu0 }
 0x6bc   : > { %v2891_v47 = vpop.f32.mrb[42].mxu0 }
 0x6bd   : > { %v1737_v25 = vpack.c.bf16 %v2891_v47, %v2890_v46  ;;  %v1704_v51 = vpop.f32.mrb[43].mxu0 }
 0x6be   : > { %v1736_v11 = vpack.c.bf16 %v1704_v51, %v1701_v19 }
 0x6bf   : > { %v1757_v3 = vsel %vm586_vm5, %v1737_v25, %v3966_v28 }
 0x6c0   : > { %v1754_v20 = vsel %vm586_vm5, %v1736_v11, %v3977_v26 }
 0x6c1   : > { %2912 = vmatprep.mubr.msk.bf16.mxu1 %vm1017_vm3, %v1754_v20 }
 0x6c2   : > { %v2894_v9 = vpop.f32.mrb[44].mxu0  ;;  %2913 = vmatmul.mubr.msk.bf16.gmra.mrb[40].mxu1 %vm1017_vm3, %v1757_v3 }
 0x6c3   : > { %v1717_v62 = vpop.f32.mrb[45].mxu0 }
 0x6c4   : > { %v2895_v14 = vpop.f32.mrb[46].mxu0 }
 0x6c5   : > { %v1739_v30 = vpack.c.bf16 %v2895_v14, %v2894_v9  ;;  %v1720_v33 = vpop.f32.mrb[47].mxu0 }
 0x6c6   : > { %v1738_v0 = vpack.c.bf16 %v1720_v33, %v1717_v62 }
 0x6c7   : > { %v1763_v26 = vsel %vm586_vm5, %v1739_v30, %v4006_v35 }
 0x6c8   : > { %v1760_v6 = vsel %vm586_vm5, %v1738_v0, %v3996_v21 }
 0x6c9   : > { %2916 = vmatprep.mubr.msk.bf16.mxu1 %vm1017_vm3, %v1760_v6 }
 0x6ca   : > { %2917 = vmatmul.mubr.msk.bf16.gmra.mrb[44].mxu1 %vm1017_vm3, %v1763_v26 }
 0x785   : > { %v2906_v56 = vpop.f32.mrb[32].mxu1 }
 0x786   : > { %v4042_v28 = vadd.f32 %v2906_v56, %v3660_v45  ;;  %v1814_v50 = vpop.f32.mrb[33].mxu1 }
 0x787   : > { %v2907_v18 = vpop.f32.mrb[34].mxu1  ;;  %v4050_v57 = vadd.f32 %v3660_v45, %v1814_v50 }
 0x788   : > { %v4045_v24 = vadd.f32 %v2907_v18, %v3660_v45  ;;  %1993 = vrot.lane.b32.xlu0 %v4042_v28, %s3318_s21  ;;  %v1817_v21 = vpop.f32.mrb[35].mxu1  ;;  %v2653_v19 = vmul.f32 -1.442695, %v4042_v28 }
 0x789   : > { %v4055_v35 = vadd.f32 %v3660_v45, %v1817_v21  ;;  %v2651_v25 = vmul.f32 -1.442695, %v4050_v57 }
 0x78a   : > { %1995 = vrot.lane.b32.xlu1 %v4045_v24, %s3318_s21  ;;  %v2654_v47 = vmul.f32 -1.442695, %v4045_v24  ;;  %3122 = vpow2.f32 %v2653_v19 }
 0x78b   : > { %v2652_v51 = vmul.f32 -1.442695, %v4055_v35 }
 0x78c   : > { %1989 = vrot.lane.b32.xlu0 %v4050_v57, %s3318_s21  ;;  %3124 = vpow2.f32 %v2654_v47 }
 0x78d   : > { %v2910_v7 = vpop.f32.mrb[36].mxu1  ;;  %3126 = vpow2.f32 %v2651_v25 }
 0x78e   : > { %v4060_v10 = vadd.f32 %v2910_v7, %v3660_v45  ;;  %1991 = vrot.lane.b32.xlu1 %v4055_v35, %s3318_s21  ;;  %v1830_v27 = vpop.f32.mrb[37].mxu1  ;;  %3128 = vpow2.f32 %v2652_v51 }
 0x78f   : > { %v2911_v49 = vpop.f32.mrb[38].mxu1  ;;  %v4070_v12 = vadd.f32 %v3660_v45, %v1830_v27 }
 0x790   : > { %v4065_v52 = vadd.f32 %v2911_v49, %v3660_v45  ;;  %2001 = vrot.lane.b32.xlu0 %v4060_v10, %s3318_s21  ;;  %v1833_v48 = vpop.f32.mrb[39].mxu1  ;;  %v2657_v11 = vmul.f32 -1.442695, %v4060_v10 }
 0x791   : > { %v4075_v5 = vadd.f32 %v3660_v45, %v1833_v48  ;;  %v2655_v3 = vmul.f32 -1.442695, %v4070_v12 }
 0x792   : > { %2003 = vrot.lane.b32.xlu1 %v4065_v52, %s3318_s21  ;;  %v2658_v20 = vmul.f32 -1.442695, %v4065_v52  ;;  %3130 = vpow2.f32 %v2657_v11 }
 0x793   : > { %v2656_v9 = vmul.f32 -1.442695, %v4075_v5 }
 0x794   : > { %1997 = vrot.lane.b32.xlu0 %v4070_v12, %s3318_s21  ;;  %3132 = vpow2.f32 %v2658_v20  ;;  %v3123_v62 = vpop.eup %3122 }
 0x795   : > { %v2914_v4 = vpop.f32.mrb[40].mxu1  ;;  %3134 = vpow2.f32 %v2655_v3  ;;  %v1927_v33 = vadd.f32 1.0, %v3123_v62 }
 0x796   : > { %v4080_v54 = vadd.f32 %v2914_v4, %v3660_v45  ;;  %1999 = vrot.lane.b32.xlu1 %v4075_v5, %s3318_s21  ;;  %v1846_v59 = vpop.f32.mrb[41].mxu1  ;;  %v3125_v14 = vpop.eup %3124  ;;  %3136 = vpow2.f32 %v2656_v9 }
 0x797   : > { %v2915_v2 = vpop.f32.mrb[42].mxu1  ;;  %v4090_v38 = vadd.f32 %v3660_v45, %v1846_v59  ;;  %v3127_v0 = vpop.eup %3126  ;;  %v1928_v26 = vadd.f32 1.0, %v3125_v14 }
 0x798   : > { %v4085_v63 = vadd.f32 %v2915_v2, %v3660_v45  ;;  %2009 = vrot.lane.b32.xlu0 %v4080_v54, %s3318_s21  ;;  %v1849_v34 = vpop.f32.mrb[43].mxu1  ;;  %v2661_v30 = vmul.f32 -1.442695, %v4080_v54  ;;  %v3129_v56 = vpop.eup %3128  ;;  %v1925_v21 = vadd.f32 1.0, %v3127_v0 }
 0x799   : > { %v4095_v39 = vadd.f32 %v3660_v45, %v1849_v34  ;;  %v2659_v50 = vmul.f32 -1.442695, %v4090_v38  ;;  %v1926_v49 = vadd.f32 1.0, %v3129_v56 }
 0x79a   : > { %2011 = vrot.lane.b32.xlu1 %v4085_v63, %s3318_s21  ;;  %v2662_v6 = vmul.f32 -1.442695, %v4085_v63  ;;  %3138 = vpow2.f32 %v2661_v30 }
 0x79b   : > { %3140 = vrcp.f32 %v1927_v33  ;;  %v2660_v7 = vmul.f32 -1.442695, %v4095_v39 }
 0x79c   : > { %2005 = vrot.lane.b32.xlu0 %v4090_v38, %s3318_s21  ;;  %v3131_v18 = vpop.eup %3130  ;;  %3142 = vpow2.f32 %v2662_v6 }
 0x79d   : > { %v2918_v40 = vpop.f32.mrb[44].mxu1  ;;  %3144 = vrcp.f32 %v1928_v26  ;;  %v1931_v48 = vadd.f32 1.0, %v3131_v18 }
 0x79e   : > { %2007 = vrot.lane.b32.xlu1 %v4095_v39, %s3318_s21  ;;  %v1862_v41 = vpop.f32.mrb[45].mxu1  ;;  %v4110_v45 = vadd.f32 %v3218_v42, %v2918_v40  ;;  %v3133_v27 = vpop.eup %3132  ;;  %3146 = vpow2.f32 %v2659_v50 }
 0x79f   : > { %v4104_v44 = vadd.f32 %v3218_v42, %v1862_v41  ;;  %v2919_v55 = vpop.f32.mrb[46].mxu1  ;;  %v3135_v4 = vpop.eup %3134  ;;  %3148 = vrcp.f32 %v1925_v21  ;;  %v1932_v2 = vadd.f32 1.0, %v3133_v27 }
 0x7a0   : > { %v1865_v8 = vpop.f32.mrb[47].mxu1  ;;  %v4114_v46 = vadd.f32 %v3218_v42, %v2919_v55  ;;  %3150 = vpow2.f32 %v2660_v7  ;;  %v3137_v34 = vpop.eup %3136  ;;  %v1929_v41 = vadd.f32 1.0, %v3135_v4 }
 0x7a1   : > { %v4106_v13 = vadd.f32 %v3218_v42, %v1865_v8  ;;  %2013 = vrot.lane.b32.xlu0 %v4104_v44, %s3318_s21  ;;  %v2663_v59 = vmul.f32 -1.442695, %v4104_v44  ;;  %3152 = vrcp.f32 %v1926_v49  ;;  %v2665_v42 = vmul.f32 -1.442695, %v4110_v45 }
 0x7a2   : > { %3154 = vrcp.f32 %v1931_v48  ;;  %v1930_v8 = vadd.f32 1.0, %v3137_v34  ;;  %v2666_v47 = vmul.f32 -1.442695, %v4114_v46 }
 0x7a3   : > { %2015 = vrot.lane.b32.xlu1 %v4106_v13, %s3318_s21  ;;  %v2664_v40 = vmul.f32 -1.442695, %v4106_v13  ;;  %3156 = vpow2.f32 %v2663_v59 }
 0x7a4   : > { %v3139_v55 = vpop.eup %3138  ;;  %3158 = vrcp.f32 %v1932_v2 }
 0x7a5   : > { %2017 = vrot.lane.b32.xlu0 %v4110_v45, %s3318_s21  ;;  %v4135_v19 = vpop.eup %3140  ;;  %3160 = vpow2.f32 %v2664_v40  ;;  %v1935_v3 = vadd.f32 1.0, %v3139_v55 }
 0x7a6   : > { %v3143_v51 = vpop.eup %3142  ;;  %3162 = vrcp.f32 %v1929_v41 }
 0x7a7   : > { %2019 = vrot.lane.b32.xlu1 %v4114_v46, %s3318_s21  ;;  %v4139_v20 = vpop.eup %3144  ;;  %3164 = vpow2.f32 %v2665_v42  ;;  %v1936_v33 = vadd.f32 1.0, %v3143_v51 }
 0x7a8   : > { %v3147_v62 = vpop.eup %3146  ;;  %3166 = vrcp.f32 %v1930_v8 }
 0x7a9   : > { %v4143_v30 = vpop.eup %3148  ;;  %3168 = vpow2.f32 %v2666_v47  ;;  %v1933_v50 = vadd.f32 1.0, %v3147_v62 }
 0x7aa   : > { %v3151_v6 = vpop.eup %3150  ;;  %3170 = vrcp.f32 %v1935_v3 }
 0x7ab   : > { %v4147_v56 = vpop.eup %3152  ;;  %3172 = vrcp.f32 %v1936_v33  ;;  %v1934_v49 = vadd.f32 1.0, %v3151_v6 }
 0x7ac   : > { %v4149_v21 = vpop.eup %3154  ;;  %3174 = vrcp.f32 %v1933_v50 }
 0x7ad   : > { %v3157_v27 = vpop.eup %3156  ;;  %3176 = vrcp.f32 %v1934_v49 }
 0x7ae   : > { %v4153_v4 = vpop.eup %3158  ;;  %v1937_v41 = vadd.f32 1.0, %v3157_v27 }
 0x7af   : > { %v3161_v2 = vpop.eup %3160 }
 0x7b0   : > { %v4157_v40 = vpop.eup %3162  ;;  %3178 = vrcp.f32 %v1937_v41 }
 0x7b1   : > { %v3165_v55 = vpop.eup %3164 }
 0x7b2   : > { %v4161_v47 = vpop.eup %3166 }
 0x7fa   : > { %v1994_v25 = vpop.permute.xlu0 %1993 }
 0x7fb   : > { %v2039_v11 = vmul.f32 %v4135_v19, %v1994_v25  ;;  %v1938_v25 = vadd.f32 1.0, %v3161_v2 }
 0x7fc   : > { %v1996_v9 = vpop.permute.xlu1 %1995 }
 0x7fd   : > { %v2040_v14 = vmul.f32 %v4139_v20, %v1996_v9  ;;  %2073 = vrot.lane.b32.xlu0 %v2039_v11, %s3319_s19  ;;  %v3169_v11 = vpop.eup %3168  ;;  %v1939_v9 = vadd.f32 1.0, %v3165_v55  ;;  %3180 = vrcp.f32 %v1938_v25 }
 0x7fe   : > { %v1990_v0 = vpop.permute.xlu0 %1989 }
 0x7ff   : > { %v2037_v26 = vmul.f32 %v4143_v30, %v1990_v0  ;;  %2075 = vrot.lane.b32.xlu1 %v2040_v14, %s3319_s19  ;;  %v4167_v14 = vpop.eup %3170  ;;  %v1940_v0 = vadd.f32 1.0, %v3169_v11  ;;  %3182 = vrcp.f32 %v1939_v9 }
 0x800   : > { %v1992_v18 = vpop.permute.xlu1 %1991 }
 0x801   : > { %v2038_v7 = vmul.f32 %v4147_v56, %v1992_v18  ;;  %2069 = vrot.lane.b32.xlu0 %v2037_v26, %s3319_s19  ;;  %v4171_v26 = vpop.eup %3172  ;;  %3184 = vrcp.f32 %v1940_v0 }
 0x802   : > { %v2002_v48 = vpop.permute.xlu0 %2001 }
 0x803   : > { %v2043_v59 = vmul.f32 %v4149_v21, %v2002_v48  ;;  %2071 = vrot.lane.b32.xlu1 %v2038_v7, %s3319_s19  ;;  %v4175_v7 = vpop.eup %3174 }
 0x804   : > { %v2004_v34 = vpop.permute.xlu1 %2003  ;;  %v4179_v48 = vpop.eup %3176 }
 0x805   : > { %v2044_v42 = vmul.f32 %v4153_v4, %v2004_v34  ;;  %2081 = vrot.lane.b32.xlu0 %v2043_v59, %s3319_s19  ;;  %v4183_v34 = vpop.eup %3178 }
 0x806   : > { %v1998_v8 = vpop.permute.xlu0 %1997 }
 0x807   : > { %v2041_v51 = vmul.f32 %v4157_v40, %v1998_v8  ;;  %2083 = vrot.lane.b32.xlu1 %v2044_v42, %s3319_s19  ;;  %v4187_v55 = vpop.eup %3180 }
 0x808   : > { %v2000_v3 = vpop.permute.xlu1 %1999 }
 0x809   : > { %v2042_v62 = vmul.f32 %v4161_v47, %v2000_v3  ;;  %2077 = vrot.lane.b32.xlu0 %v2041_v51, %s3319_s19  ;;  %v4191_v51 = vpop.eup %3182 }
 0x80a   : > { %v2010_v33 = vpop.permute.xlu0 %2009 }
 0x80b   : > { %v2047_v6 = vmul.f32 %v4167_v14, %v2010_v33  ;;  %2079 = vrot.lane.b32.xlu1 %v2042_v62, %s3319_s19  ;;  %v4195_v9 = vpop.eup %3184 }
 0x80c   : > { %v2012_v50 = vpop.permute.xlu1 %2011 }
 0x80d   : > { %v2048_v18 = vmul.f32 %v4171_v26, %v2012_v50  ;;  %2089 = vrot.lane.b32.xlu0 %v2047_v6, %s3319_s19 }
 0x80e   : > { %v2006_v27 = vpop.permute.xlu0 %2005 }
 0x80f   : > { %v2045_v49 = vmul.f32 %v4175_v7, %v2006_v27  ;;  %2091 = vrot.lane.b32.xlu1 %v2048_v18, %s3319_s19 }
 0x810   : > { %v2008_v59 = vpop.permute.xlu1 %2007 }
 0x811   : > { %v2046_v2 = vmul.f32 %v4179_v48, %v2008_v59  ;;  %2085 = vrot.lane.b32.xlu0 %v2045_v49, %s3319_s19 }
 0x813   : > { %2087 = vrot.lane.b32.xlu1 %v2046_v2, %s3319_s19  ;;  %v2014_v41 = vpop.permute.xlu0 %2013 }
 0x814   : > { %v2049_v42 = vmul.f32 %v4183_v34, %v2014_v41 }
 0x815   : > { %v2016_v8 = vpop.permute.xlu1 %2015 }
 0x816   : > { %v2050_v25 = vmul.f32 %v4187_v55, %v2016_v8  ;;  %2093 = vrot.lane.b32.xlu0 %v2049_v42, %s3319_s19 }
 0x817   : > { %v2018_v11 = vpop.permute.xlu0 %2017 }
 0x818   : > { %v2051_v3 = vmul.f32 %v4191_v51, %v2018_v11  ;;  %2095 = vrot.lane.b32.xlu1 %v2050_v25, %s3319_s19 }
 0x819   : > { %v2020_v62 = vpop.permute.xlu1 %2019 }
 0x81a   : > { %v2052_v33 = vmul.f32 %v4195_v9, %v2020_v62  ;;  %2097 = vrot.lane.b32.xlu0 %v2051_v3, %s3319_s19 }
 0x81c   : > { %2099 = vrot.lane.b32.xlu1 %v2052_v33, %s3319_s19  ;;  %s2480_s19 = sshll.u32 %s4308_s17, 4  ;;  %s4330_s19 = int_to_ptr.vmem [resolvable:$true] %s2480_s19 }
 0x81d   : > { %s3247_s21 = scalar_lea.vmem %s4330_s19, 2048  ;;  %p3254_p3 = scmp.lt.s32.totalorder %s4330_s19, %s3252_s22 }
 0x81e   : > { %p3248_p9 = scmp.ne.s32.totalorder %s4330_s19, %s3247_s21  ;;  %p3255_p4 = scmp.lt.s32.totalorder %s3253_s23, %s3247_s21 }
 0x820   : > { %p3249_p12 = pnand %p3248_p9, %p4396_p10  ;;  %p3256_p7 = por %p3255_p4, %p3254_p3 }
 0x822   : > { %p3250_p2 = pneg %p3249_p12 }
 0x824   : > { %p3257_p8 = pnand %p3256_p7, %p3250_p2 }
 0x86f   : > { %v2074_v0 = vpop.permute.xlu0 %2073 }
 0x870   : > { %v2119_v6 = vadd.f32 %v2074_v0, %v4042_v28 }
 0x871   : > { %v2076_v50 = vpop.permute.xlu1 %2075 }
 0x872   : > { %3186 = vtanh.f32 %v2119_v6  ;;  %v2120_v18 = vadd.f32 %v2076_v50, %v4045_v24 }
 0x873   : > { %v2070_v27 = vpop.permute.xlu0 %2069 }
 0x874   : > { %3188 = vtanh.f32 %v2120_v18  ;;  %v2117_v49 = vadd.f32 %v2070_v27, %v4050_v57 }
 0x875   : > { %v2072_v59 = vpop.permute.xlu1 %2071 }
 0x876   : > { %3190 = vtanh.f32 %v2117_v49  ;;  %v2118_v2 = vadd.f32 %v2072_v59, %v4055_v35 }
 0x877   : > { %v2082_v41 = vpop.permute.xlu0 %2081 }
 0x878   : > { %3192 = vtanh.f32 %v2118_v2  ;;  %v2123_v42 = vadd.f32 %v2082_v41, %v4060_v10 }
 0x879   : > { %v2084_v8 = vpop.permute.xlu1 %2083 }
 0x87a   : > { %3194 = vtanh.f32 %v2123_v42  ;;  %v2124_v28 = vadd.f32 %v2084_v8, %v4065_v52 }
 0x87b   : > { %v2078_v25 = vpop.permute.xlu0 %2077 }
 0x87c   : > { %v3187_v11 = vpop.eup %3186  ;;  %3196 = vtanh.f32 %v2124_v28  ;;  %v2121_v24 = vadd.f32 %v2078_v25, %v4070_v12 }
 0x87d   : > { %v2080_v3 = vpop.permute.xlu1 %2079  ;;  %2185 = vrot.lane.b32.xlu0 %v3187_v11, %s3320_s20 }
 0x87e   : > { %v3189_v57 = vpop.eup %3188  ;;  %3198 = vtanh.f32 %v2121_v24  ;;  %v2122_v35 = vadd.f32 %v2080_v3, %v4075_v5  ;;  %v3025_v3 = vld [vmem:[%s4383_s5 + $0x8] sm:$0xff]  }
 0x87f   : > { %2187 = vrot.lane.b32.xlu1 %v3189_v57, %s3320_s20  ;;  %v2090_v62 = vpop.permute.xlu0 %2089 }
 0x880   : > { %v3191_v10 = vpop.eup %3190  ;;  %3200 = vtanh.f32 %v2122_v35  ;;  %v2127_v33 = vadd.f32 %v2090_v62, %v4080_v54  ;;  %v2151_v62 = vsub.f32 1.0, %v4135_v19 }
 0x881   : > { %v2092_v52 = vpop.permute.xlu1 %2091  ;;  %2181 = vrot.lane.b32.xlu0 %v3191_v10, %s3320_s20 }
 0x882   : > { %v3193_v0 = vpop.eup %3192  ;;  %3202 = vtanh.f32 %v2127_v33  ;;  %v2128_v12 = vadd.f32 %v2092_v52, %v4085_v63  ;;  %v2152_v52 = vsub.f32 1.0, %v4139_v20 }
 0x883   : > { %2183 = vrot.lane.b32.xlu1 %v3193_v0, %s3320_s20  ;;  %v2086_v6 = vpop.permute.xlu0 %2085 }
 0x884   : > { %v3195_v50 = vpop.eup %3194  ;;  %3204 = vtanh.f32 %v2128_v12  ;;  %v2125_v5 = vadd.f32 %v2086_v6, %v4090_v38  ;;  %v2247_v12 = vmul.f32 %v4135_v19, %v3899_v36  ;;  %v2248_v6 = vmul.f32 %v4139_v20, %v3901_v37 }
 0x885   : > { %v2088_v18 = vpop.permute.xlu1 %2087  ;;  %2193 = vrot.lane.b32.xlu0 %v3195_v50, %s3320_s20  ;;  %v2246_v36 = vmul.f32 %v4147_v56, %v3913_v22  ;;  %v2155_v37 = vsub.f32 1.0, %v4149_v21 }
 0x886   : > { %v3197_v27 = vpop.eup %3196  ;;  %3206 = vtanh.f32 %v2125_v5  ;;  %v2126_v54 = vadd.f32 %v2088_v18, %v4095_v39  ;;  %v2149_v5 = vsub.f32 1.0, %v4143_v30 }
 0x887   : > { %2195 = vrot.lane.b32.xlu1 %v3197_v27, %s3320_s20 }
 0x888   : > { %v3199_v49 = vpop.eup %3198  ;;  %3208 = vtanh.f32 %v2126_v54  ;;  %v2094_v59 = vpop.permute.xlu0 %2093 }
 0x889   : > { %v2129_v63 = vadd.f32 %v2094_v59, %v4104_v44  ;;  %2189 = vrot.lane.b32.xlu0 %v3199_v49, %s3320_s20  ;;  %v2150_v59 = vsub.f32 1.0, %v4147_v56  ;;  %v2153_v56 = vsub.f32 1.0, %v4157_v40 }
 0x88a   : > { %v3201_v2 = vpop.eup %3200  ;;  %v2096_v41 = vpop.permute.xlu1 %2095 }
 0x88b   : > { %3210 = vtanh.f32 %v2129_v63  ;;  %v2130_v38 = vadd.f32 %v2096_v41, %v4106_v13  ;;  %2191 = vrot.lane.b32.xlu1 %v3201_v2, %s3320_s20  ;;  %v2245_v63 = vmul.f32 %v4143_v30, %v3911_v61 }
 0x88c   : > { %v3203_v42 = vpop.eup %3202  ;;  %v2098_v8 = vpop.permute.xlu0 %2097 }
 0x88d   : > { %3212 = vtanh.f32 %v2130_v38  ;;  %v2131_v39 = vadd.f32 %v2098_v8, %v4110_v45  ;;  %2201 = vrot.lane.b32.xlu0 %v3203_v42, %s3320_s20  ;;  %v3024_v45 = vld [vmem:[%s4383_s5] sm:$0xff]  }
 0x88e   : > { %v3205_v28 = vpop.eup %3204  ;;  %v2100_v25 = vpop.permute.xlu1 %2099  ;;  %2920 = vmatprep.subr.bf16.mxu0 %v3024_v45  ;;  %2940 = vmatprep.subr.bf16.mxu1 %v3024_v45 }
 0x88f   : > { %3214 = vtanh.f32 %v2131_v39  ;;  %v2132_v44 = vadd.f32 %v2100_v25, %v4114_v46  ;;  %2203 = vrot.lane.b32.xlu1 %v3205_v28, %s3320_s20  ;;  %2921 = vmatpush3.bf16.msra.mxu0 %v3024_v45  ;;  %v2156_v39 = vsub.f32 1.0, %v4153_v4  ;;  %v2251_v28 = vmul.f32 %v4149_v21, %v3925_v31 }
 0x890   : > { %v3207_v11 = vpop.eup %3206  ;;  %2922 = vmatprep.subr.bf16.mxu0 %v3025_v3  ;;  %2942 = vmatpush3.bf16.msra.mxu1 %v3024_v45  ;;  %v2252_v25 = vmul.f32 %v4153_v4, %v3927_v32  ;;  %v2154_v45 = vsub.f32 1.0, %v4161_v47  ;;  %v2249_v31 = vmul.f32 %v4157_v40, %v3939_v60  ;;  %v2250_v21 = vmul.f32 %v4161_v47, %v3941_v15 }
 0x891   : > { %3216 = vtanh.f32 %v2132_v44  ;;  %2197 = vrot.lane.b32.xlu0 %v3207_v11, %s3320_s20  ;;  %2941 = vmatprep.subr.bf16.mxu1 %v3025_v3  ;;  %v2158_v60 = vsub.f32 1.0, %v4179_v48  ;;  %v2159_v15 = vsub.f32 1.0, %v4167_v14 }
 0x892   : > { %v3209_v13 = vpop.eup %3208 }
 0x893   : > { %2199 = vrot.lane.b32.xlu1 %v3209_v13, %s3320_s20  ;;  %2923 = vmatpush3.bf16.msra.mxu0 %v3025_v3 }
 0x894   : > { %2943 = vmatpush3.bf16.msra.mxu1 %v3025_v3 }
 0x895   : > { %v3211_v24 = vpop.eup %3210 }
 0x896   : > { %2205 = vrot.lane.b32.xlu0 %v3211_v24, %s3320_s20 }
 0x897   : > { %v3213_v46 = vpop.eup %3212 }
 0x898   : > { %2207 = vrot.lane.b32.xlu1 %v3213_v46, %s3320_s20 }
 0x899   : > { %v3215_v57 = vpop.eup %3214 }
 0x89a   : > { %2209 = vrot.lane.b32.xlu0 %v3215_v57, %s3320_s20 }
 0x89b   : > { %v3217_v35 = vpop.eup %3216 }
 0x89c   : > { %2211 = vrot.lane.b32.xlu1 %v3217_v35, %s3320_s20 }
 0x8ef   : > { %v2186_v10 = vpop.permute.xlu0 %2185 }
 0x8f0   : > { %v2231_v33 = vmul.f32 %v2186_v10, %v2151_v62 }
 0x8f1   : > { %v2188_v0 = vpop.permute.xlu1 %2187 }
 0x8f2   : > { %v2232_v50 = vmul.f32 %v2188_v0, %v2152_v52  ;;  %v2263_v27 = vadd.f32 %v2247_v12, %v2231_v33  ;;  %v2157_v33 = vsub.f32 1.0, %v4175_v7  ;;  %v2160_v0 = vsub.f32 1.0, %v4171_v26 }
 0x8f3   : > { %v2182_v18 = vpop.permute.xlu0 %2181 }
 0x8f4   : > { %v2264_v54 = vadd.f32 %v2248_v6, %v2232_v50  ;;  %v2229_v49 = vmul.f32 %v2182_v18, %v2149_v5  ;;  %v2253_v6 = vmul.f32 %v4175_v7, %v3968_v16  ;;  %v2254_v50 = vmul.f32 %v4179_v48, %v3970_v23 }
 0x8f5   : > { %v2184_v2 = vpop.permute.xlu1 %2183  ;;  %v2161_v18 = vsub.f32 1.0, %v4183_v34  ;;  %v2257_v23 = vmul.f32 %v4183_v34, %v3988_v1  ;;  %v2258_v48 = vmul.f32 %v4187_v55, %v3990_v17  ;;  %v2259_v1 = vmul.f32 %v4191_v51, %v3998_v58 }
 0x8f6   : > { %v2278_v41 = vpack.c.bf16 %v2264_v54, %v2263_v27  ;;  %v2230_v19 = vmul.f32 %v2184_v2, %v2150_v59  ;;  %v2261_v38 = vadd.f32 %v2245_v63, %v2229_v49  ;;  %v2256_v54 = vmul.f32 %v4171_v26, %v3955_v53 }
 0x8f7   : > { %v2194_v20 = vpop.permute.xlu0 %2193  ;;  %v2163_v53 = vsub.f32 1.0, %v4191_v51  ;;  %v2260_v17 = vmul.f32 %v4195_v9, %v4000_v29 }
 0x8f8   : > { %v2262_v42 = vadd.f32 %v2246_v36, %v2230_v19  ;;  %v2235_v8 = vmul.f32 %v2194_v20, %v2155_v37  ;;  %2303 = vrot.lane.b32.xlu1 %v2278_v41, %s3320_s20  ;;  %v2162_v41 = vsub.f32 1.0, %v4187_v55  ;;  %v2255_v36 = vmul.f32 %v4167_v14, %v3953_v43 }
 0x8f9   : > { %v2196_v61 = vpop.permute.xlu1 %2195  ;;  %v2164_v43 = vsub.f32 1.0, %v4195_v9 }
 0x8fa   : > { %v2277_v30 = vpack.c.bf16 %v2262_v42, %v2261_v38  ;;  %v2236_v22 = vmul.f32 %v2196_v61, %v2156_v39  ;;  %v2267_v11 = vadd.f32 %v2251_v28, %v2235_v8 }
 0x8fb   : > { %v2190_v44 = vpop.permute.xlu0 %2189 }
 0x8fc   : > { %v2268_v13 = vadd.f32 %v2252_v25, %v2236_v22  ;;  %v2233_v24 = vmul.f32 %v2190_v44, %v2153_v56  ;;  %2301 = vrot.lane.b32.xlu0 %v2277_v30, %s3320_s20 }
 0x8fd   : > { %v2192_v3 = vpop.permute.xlu1 %2191 }
 0x8fe   : > { %v2280_v46 = vpack.c.bf16 %v2268_v13, %v2267_v11  ;;  %v2234_v32 = vmul.f32 %v2192_v3, %v2154_v45  ;;  %v2265_v57 = vadd.f32 %v2249_v31, %v2233_v24  ;;  %v2667_v11 = vld [vmem:[%s4384_s6 + $0x3] ss:$0 sm:$0xff] }
 0x8ff   : > { %v2202_v4 = vpop.permute.xlu0 %2201 }
 0x900   : > { %v2266_v35 = vadd.f32 %v2250_v21, %v2234_v32  ;;  %2307 = vrot.lane.b32.xlu1 %v2280_v46, %s3320_s20  ;;  %v2239_v27 = vmul.f32 %v2202_v4, %v2159_v15 }
 0x901   : > { %v2204_v62 = vpop.permute.xlu1 %2203 }
 0x902   : > { %v2279_v10 = vpack.c.bf16 %v2266_v35, %v2265_v57  ;;  %v2240_v47 = vmul.f32 %v2204_v62, %v2160_v0  ;;  %v2271_v26 = vadd.f32 %v2255_v36, %v2239_v27 }
 0x903   : > { %v2198_v52 = vpop.permute.xlu0 %2197 }
 0x904   : > { %v2237_v12 = vmul.f32 %v2198_v52, %v2157_v33  ;;  %2305 = vrot.lane.b32.xlu0 %v2279_v10, %s3320_s20  ;;  %v2272_v16 = vadd.f32 %v2256_v54, %v2240_v47 }
 0x905   : > { %v2200_v40 = vpop.permute.xlu1 %2199 }
 0x906   : > { %v2238_v5 = vmul.f32 %v2200_v40, %v2158_v60  ;;  %v2269_v49 = vadd.f32 %v2253_v6, %v2237_v12  ;;  %v2282_v14 = vpack.c.bf16 %v2272_v16, %v2271_v26 }
 0x908   : > { %v2270_v59 = vadd.f32 %v2254_v50, %v2238_v5  ;;  %v2206_v63 = vpop.permute.xlu0 %2205 }
 0x909   : > { %v2241_v2 = vmul.f32 %v2206_v63, %v2161_v18 }
 0x90a   : > { %v2281_v7 = vpack.c.bf16 %v2270_v59, %v2269_v49  ;;  %v2208_v19 = vpop.permute.xlu1 %2207 }
 0x90b   : > { %v2242_v37 = vmul.f32 %v2208_v19, %v2162_v41  ;;  %v2273_v38 = vadd.f32 %v2257_v23, %v2241_v2 }
 0x90c   : > { %2309 = vrot.lane.b32.xlu0 %v2281_v7, %s3320_s20  ;;  %v2210_v20 = vpop.permute.xlu0 %2209 }
 0x90d   : > { %v2274_v42 = vadd.f32 %v2258_v48, %v2242_v37  ;;  %v2243_v8 = vmul.f32 %v2210_v20, %v2163_v53 }
 0x90e   : > { %v2212_v39 = vpop.permute.xlu1 %2211 }
 0x90f   : > { %v2283_v28 = vpack.c.bf16 %v2274_v42, %v2273_v38  ;;  %v2244_v34 = vmul.f32 %v2212_v39, %v2164_v43  ;;  %v2275_v55 = vadd.f32 %v2259_v1, %v2243_v8 }
 0x910   : > { %2311 = vrot.lane.b32.xlu0 %v2282_v14, %s3320_s20 }
 0x911   : > { %v2276_v61 = vadd.f32 %v2260_v17, %v2244_v34  ;;  %2313 = vrot.lane.b32.xlu1 %v2283_v28, %s3320_s20 }
 0x913   : > { %v2284_v30 = vpack.c.bf16 %v2276_v61, %v2275_v55 }
 0x915   : > { %2315 = vrot.lane.b32.xlu1 %v2284_v30, %s3320_s20 }
 0x96a   : > { %v2304_v22 = vpop.permute.xlu1 %2303 }
 0x96e   : > { %v2302_v25 = vpop.permute.xlu0 %2301 }
 0x96f   : > { %2924 = vmatprep.mubr.msk.bf16.mxu0 %vm586_vm5, %v2302_v25 }
 0x970   : > { %2925 = vmatmul.mubr.msk.bf16.vlgmr.msra.gmra.mrb[48].mxu0 %vm586_vm5, %v2304_v22 }
 0x972   : > { %v2308_v29 = vpop.permute.xlu1 %2307 }
 0x976   : > { %v2306_v58 = vpop.permute.xlu0 %2305 }
 0x977   : > { %2928 = vmatprep.mubr.msk.bf16.mxu0 %vm586_vm5, %v2306_v58 }
 0x978   : > { %2929 = vmatmul.mubr.msk.bf16.gmra.mrb[52].mxu0 %vm586_vm5, %v2308_v29 }
 0x97e   : > { %v2310_v51 = vpop.permute.xlu0 %2309 }
 0x97f   : > { %2932 = vmatprep.mubr.msk.bf16.mxu0 %vm586_vm5, %v2310_v51 }
 0x982   : > { %v2312_v9 = vpop.permute.xlu0 %2311 }
 0x983   : > { %v2314_v56 = vpop.permute.xlu1 %2313  ;;  %2933 = vmatmul.mubr.msk.bf16.gmra.mrb[56].mxu0 %vm586_vm5, %v2312_v9 }
 0x984   : > { %2936 = vmatprep.mubr.msk.bf16.mxu1 %vm586_vm5, %v2314_v56 }
 0x987   : > { %v2316_v44 = vpop.permute.xlu1 %2315 }
 0x988   : > { %2937 = vmatmul.mubr.msk.bf16.vlgmr.msra.gmra.mrb[48].mxu1 %vm586_vm5, %v2316_v44 }
 0xa43   : > { %v2926_v13 = vpop.f32.mrb[48].mxu0 }
 0xa44   : > { %v2396_v24 = vadd.f32 %v2926_v13, %v2667_v11  ;;  %v2387_v45 = vpop.f32.mrb[49].mxu0 }
 0xa45   : > { %v2388_v3 = vadd.f32 %v2667_v11, %v2387_v45  ;;  %v2927_v46 = vpop.f32.mrb[50].mxu0 }
 0xa46   : > { %2452 = vst [vmem:[%s4308_s17 + $0x10] sm:$0xff] %v2396_v24  ;;  %v2399_v31 = vadd.f32 %v2927_v46, %v2667_v11  ;;  %v2390_v21 = vpop.f32.mrb[51].mxu0 }
 0xa47   : > { %2450 = vst [vmem:[%s4308_s17] sm:$0xff] %v2388_v3  ;;  %v2391_v32 = vadd.f32 %v2667_v11, %v2390_v21 }
 0xa48   : > { %2453 = vst [vmem:[%s4308_s17 + $0x18] sm:$0xff] %v2399_v31 }
 0xa49   : > { %2451 = vst [vmem:[%s4308_s17 + $0x8] sm:$0xff] %v2391_v32 }
 0xa4b   : > { %v2930_v4 = vpop.f32.mrb[52].mxu0 }
 0xa4c   : > { %v2412_v57 = vadd.f32 %v2930_v4, %v2667_v11  ;;  %v2403_v35 = vpop.f32.mrb[53].mxu0 }
 0xa4d   : > { %v2404_v62 = vadd.f32 %v2667_v11, %v2403_v35  ;;  %v2931_v10 = vpop.f32.mrb[54].mxu0 }
 0xa4e   : > { %2456 = vst [vmem:[%s4308_s17 + $0x30] sm:$0xff] %v2412_v57  ;;  %v2415_v33 = vadd.f32 %v2931_v10, %v2667_v11  ;;  %v2406_v52 = vpop.f32.mrb[55].mxu0 }
 0xa4f   : > { %2454 = vst [vmem:[%s4308_s17 + $0x20] sm:$0xff] %v2404_v62  ;;  %v2407_v0 = vadd.f32 %v2667_v11, %v2406_v52 }
 0xa50   : > { %2457 = vst [vmem:[%s4308_s17 + $0x38] sm:$0xff] %v2415_v33 }
 0xa51   : > { %2455 = vst [vmem:[%s4308_s17 + $0x28] sm:$0xff] %v2407_v0 }
 0xa56   : > { %v2934_v12 = vpop.f32.mrb[56].mxu0 }
 0xa57   : > { %v2428_v60 = vadd.f32 %v2934_v12, %v2667_v11  ;;  %v2419_v15 = vpop.f32.mrb[57].mxu0 }
 0xa58   : > { %v2420_v40 = vadd.f32 %v2667_v11, %v2419_v15  ;;  %v2935_v47 = vpop.f32.mrb[58].mxu0 }
 0xa59   : > { %2460 = vst [vmem:[%s4308_s17 + $0x50] sm:$0xff] %v2428_v60  ;;  %v2431_v6 = vadd.f32 %v2935_v47, %v2667_v11  ;;  %v2422_v50 = vpop.f32.mrb[59].mxu0 }
 0xa5a   : > { %2458 = vst [vmem:[%s4308_s17 + $0x40] sm:$0xff] %v2420_v40  ;;  %v2423_v5 = vadd.f32 %v2667_v11, %v2422_v50 }
 0xa5b   : > { %2461 = vst [vmem:[%s4308_s17 + $0x58] sm:$0xff] %v2431_v6  ;;  %v2938_v18 = vpop.f32.mrb[48].mxu1 }
 0xa5c   : > { %2459 = vst [vmem:[%s4308_s17 + $0x48] sm:$0xff] %v2423_v5  ;;  %v2444_v27 = vadd.f32 %v2938_v18, %v2667_v11  ;;  %v2435_v54 = vpop.f32.mrb[49].mxu1 }
 0xa5d   : > { %v2436_v49 = vadd.f32 %v2667_v11, %v2435_v54  ;;  %v2939_v59 = vpop.f32.mrb[50].mxu1 }
 0xa5e   : > { %2464 = vst [vmem:[%s4308_s17 + $0x70] sm:$0xff] %v2444_v27  ;;  %v2447_v63 = vadd.f32 %v2939_v59, %v2667_v11  ;;  %v2438_v2 = vpop.f32.mrb[51].mxu1 }
 0xa5f   : > { %2462 = vst [vmem:[%s4308_s17 + $0x60] sm:$0xff] %v2436_v49  ;;  %v2439_v41 = vadd.f32 %v2667_v11, %v2438_v2 }
 0xa60   : > { %2465 = vst [vmem:[%s4308_s17 + $0x78] sm:$0xff] %v2447_v63 }
 0xa61   : > { %2463 = vst [vmem:[%s4308_s17 + $0x68] sm:$0xff] %v2439_v41 }
 0xa62   : > { %3260 = shalt.err (!%p3257_p8)
}
 0xa63   : > { %s3261_s29 = scalar_lea.hbm %s4328_s13, 2048  ;;  %s3265_s14 = scalar_lea.hbm %s4385_s7, 4096 }
 0xa64   : > { %p3262_p11 = scmp.ne.s32.totalorder %s4328_s13, %s3261_s29  ;;  %p3266_p0 = scmp.lt.u32.totalorder %s4328_s13, %s4385_s7 }
 0xa65   : > { %p3267_p5 = scmp.lt.u32.totalorder %s3265_s14, %s3261_s29  ;;  %p3269_p9 = scmp.lt.u32.totalorder %s3261_s29, %s4328_s13 }
 0xa66   : > { %p3263_p13 = pnand %p3262_p11, %p4396_p10 }
 0xa67   : > { %p3268_p6 = por %p3267_p5, %p3266_p0 }
 0xa68   : > { %p3264_p1 = pneg %p3263_p13 }
 0xa69   : > { %p3270_p12 = por %p3269_p9, %p3268_p6 }
 0xa6b   : > { %p3271_p2 = pnand %p3270_p12, %p3264_p1 }
 0xa6d   : > { %3274 = shalt.err (!%p3271_p2)
}
 0xa6e   : > { %s3322_s20 = smov 128   ;;  %s3323_s16 = smov 8  }
 0xa6f   : > { %2948 = dma.vmem_to_hbm [thread:$0]  (%p4396_p10), %s4330_s19, 2048, %s4328_s13, %s4337_s28, %s3322_s20, %s3322_s20, %s3323_s16  }
 0xa70 PF: > { %p2960_p3 = scmp.ge.s32.totalorder %s3313_s27, 2  ;;  %s2495_s21 = sand.u32 1, %s3301_s24  }
 0xa71   : > { %p4397_p4 = scmp.ne.s32.totalorder %s4390_s12, 0  ;;  %s2496_s15 = scalar_lea.sflag [#allocation4], %s2495_s21 }
 0xa73   : > { %p2955_p7 = pnand %p2960_p3, %p4397_p4 }
 0xa75   : > { %3296 = dma.done.wait (!%p2955_p7), %s2496_s15, 2048  }
 0xa76   : > { %3298 = vsyncadd (!%p2955_p7), %s2496_s15, 4294965248  ;;  %p18_p8 = scmp.ge.s32.totalorder %s3389_s30, 4   ;;  %s4398_s24 = smov %s3305_s25 }
 0xa77   : > { %s4399_s25 = smov %s3309_s26  ;;  %s4400_s26 = smov %s3400_s10 }
 0xa78   : > { %s4401_s27 = smov %s3389_s30  ;;  %20 = sbr.rel (!%p18_p8) target bundleno = 4 (0x4), region = 91 }
 0xa7f   :  { %2501 = vsyncpa [#allocation3], 1 }
 0xa80   :  { %2503 = vsyncpa [#allocation3 + $0x1], 1 }
 0xa81   :  { %2504 = vsyncpa [#allocation4], 1 }
 0xa82   :  { %2506 = vsyncpa [#allocation4 + $0x1], 1 }

</bundles_post_ra>
